<compile_context>
chip_gen: v5e
topology: v5e:2x2
jax: 0.10.0
libtpu: 0.0.40
codegen_flags: <defaults>
</compile_context>

<pallas_src>
import functools

import jax
import jax.numpy as jnp
from jax.experimental import pallas as pl
from jax.experimental.pallas import tpu as pltpu


# hrnet_w18, features_only, out_indices=(0,1,2,3,4), conv1/conv2 stride -> 1:
HRNET_W18_FEATURE_CHANNELS = (64, 18, 36, 72, 144)
FEATURE_STRIDES = (1, 1, 2, 4, 8)
IN_CHANN = sum(HRNET_W18_FEATURE_CHANNELS)   # 334 (270 + 64 from out_index 0)
OUT_CHANN = 64                               # hidden width of the fuse head
FINAL_CHANN = 2                              # fuse output channels

# Kernel-side view: the two stride-1 features are emitted pre-concatenated by
# the producer (82 ch), so the fuse kernel sees 4 feature streams instead of 5.
FUSE_CHANNELS = (82, 36, 72, 144)
FUSE_STRIDES = (1, 2, 4, 8)
FUSE_OFFSETS = (0, 82, 118, 190)             # offsets into the 334-ch concat


# ----------------------------------------------------------------------------
# Pallas kernel: fused nearest-upsample + concat + 1x1 conv + ReLU + 1x1 conv.
# ----------------------------------------------------------------------------
def _fuse_kernel(f01_ref, f2_ref, f3_ref, f4_ref,
                 w1a_ref, w1b_ref, w1c_ref, w1d_ref,
                 b1_ref, w2_ref, b2_ref, o_ref, *, th, tw):
    """One output row-band (th rows x tw cols).

    f*_ref : (1, (th//s) * (tw//s), C_s) bf16 features at NATIVE resolution.
    w1*_ref: (C_s, 64) bf16 slices of the first 1x1-conv weight.
    b1_ref : (1, 64) f32;  w2_ref: (64, 2) bf16;  b2_ref: (1, 2) f32.
    o_ref  : (1, th * tw, 2) f32, row-major over the (th, tw) pixel grid.
    """

    def up2(x, rows, cols):
        # Nearest 2x upsample (H and W) of an f32 partial sum laid out
        # row-major over a (rows, cols) pixel grid.  The lane (channel) dim is
        # untouched; both steps are sublane broadcasts + reshapes.
        n = rows * cols
        x = jnp.broadcast_to(x.reshape(n, 1, OUT_CHANN), (n, 2, OUT_CHANN))
        x = x.reshape(2 * n, OUT_CHANN)                          # W-axis repeat
        x = jnp.broadcast_to(x.reshape(rows, 1, 2 * cols, OUT_CHANN),
                             (rows, 2, 2 * cols, OUT_CHANN))
        return x.reshape(4 * n, OUT_CHANN)                       # H-axis repeat

    def pconv(f_ref, w_ref):
        # Partial first conv: (rows_s, C_s) @ (C_s, 64) with f32 accumulation.
        return jnp.dot(f_ref[0], w_ref[...], preferred_element_type=jnp.float32)

    # Coarse-to-fine cascade (stride 8 -> 4 -> 2 -> 1): exactly one 2x upsample
    # per level, so the full-resolution (th*tw, 64) f32 partial sum is built
    # once instead of once per low-resolution feature.
    acc = pconv(f4_ref, w1d_ref)                                  # stride 8
    acc = up2(acc, th // 8, tw // 8) + pconv(f3_ref, w1c_ref)     # stride 4
    acc = up2(acc, th // 4, tw // 4) + pconv(f2_ref, w1b_ref)     # stride 2
    acc = up2(acc, th // 2, tw // 2) + pconv(f01_ref, w1a_ref)    # stride 1

    hidden = jnp.maximum(acc + b1_ref[...], 0.0).astype(jnp.bfloat16)   # ReLU
    y = jnp.dot(hidden, w2_ref[...],
                preferred_element_type=jnp.float32) + b2_ref[...]
    o_ref[0] = y.astype(o_ref.dtype)


# ----------------------------------------------------------------------------
# Tiling / VMEM budget.
# ----------------------------------------------------------------------------
def _vmem_budget():
    """(target_pixels_per_step, vmem_limit_bytes), tuned per TPU generation."""
    try:
        vmem = pltpu.get_tpu_info().vmem_capacity_bytes
    except Exception:
        return 8192, 44 * 1024 * 1024
    if vmem >= 100 * 1024 * 1024:        # v5e / v6e: 128 MiB VMEM per core
        return 16384, 64 * 1024 * 1024
    return 8192, 44 * 1024 * 1024        # v7x: 64 MiB VMEM per TensorCore


def _choose_tile_rows(height, width, target_pixels, min_row_tiles=4):
    """Output rows per grid step.

    Must be a multiple of 8 (max stride) that divides `height` (no ragged /
    OOB-reading last tile) with (rows*width) % 512 == 0 so every feature's
    row block stays 8-sublane aligned.  Prefers >= `min_row_tiles` row tiles
    (v7x megacore), otherwise the largest tile under `target_pixels`.
    """
    valid = []
    for th in range(8, height, 8):
        if height % th or (th * width) % 512 or th * width > target_pixels:
            continue
        valid.append(th)
    if not valid:
        return height
    preferred = [th for th in valid if height // th >= min_row_tiles]
    return max(preferred) if preferred else max(valid)


def fuse_pallas(feats_flat, w1_parts, b1, w2, b2, *, height, width,
                tile_rows=None):
    """Fused HRnet `fuse` head.

    feats_flat[k]: (B, (H//s_k) * (W//s_k), C_k) bf16 at native resolution,
    strides (1, 2, 4, 8), channels (82, 36, 72, 144).
    Returns (B, H * W, 2) float32, row-major over (H, W).
    """
    assert height % 8 == 0 and width % 8 == 0, "H and W must be multiples of 8"
    batch = feats_flat[0].shape[0]
    target_pixels, vmem_limit = _vmem_budget()
    if tile_rows is None:
        tile_rows = _choose_tile_rows(height, width, target_pixels)
    assert tile_rows % 8 == 0 and height % tile_rows == 0
    assert tile_rows == height or (tile_rows * width) % 512 == 0

    grid = (batch, height // tile_rows)

    in_specs = []
    for f, s in zip(feats_flat, FUSE_STRIDES):
        rows = (tile_rows // s) * (width // s)
        in_specs.append(
            pl.BlockSpec((1, rows, f.shape[-1]), lambda b, i: (b, i, 0)))
    for wp in w1_parts:
        in_specs.append(pl.BlockSpec(wp.shape, lambda b, i: (0, 0)))
    in_specs.append(pl.BlockSpec(b1.shape, lambda b, i: (0, 0)))
    in_specs.append(pl.BlockSpec(w2.shape, lambda b, i: (0, 0)))
    in_specs.append(pl.BlockSpec(b2.shape, lambda b, i: (0, 0)))

    out_spec = pl.BlockSpec((1, tile_rows * width, FINAL_CHANN),
                            lambda b, i: (b, i, 0))

    kernel = functools.partial(_fuse_kernel, th=tile_rows, tw=width)
    return pl.pallas_call(
        kernel,
        out_shape=jax.ShapeDtypeStruct((batch, height * width, FINAL_CHANN),
                                       jnp.float32),
        grid_spec=pltpu.PrefetchScalarGridSpec(
            num_scalar_prefetch=0,
            grid=grid,
            in_specs=in_specs,
            out_specs=out_spec),
        compiler_params=pltpu.CompilerParams(
            dimension_semantics=("parallel", "parallel"),
            vmem_limit_bytes=vmem_limit),
    )(*feats_flat, *w1_parts, b1, w2, b2)


# ----------------------------------------------------------------------------
# Plain-JAX glue: deterministic backbone stand-in and the public forward.
# ----------------------------------------------------------------------------
def _standin_backbone(x_nhwc, backbone_params):
    """Deterministic stand-in for the timm hrnet_w18 backbone.

    Emits bf16 features with the real backbone's channel counts and strides;
    the two stride-1 features (64 + 18 ch) are produced pre-concatenated
    (82 ch) by merging their 1x1 weights at trace time — a producer-side merge,
    no extra activation copy.
    """
    # TODO(synk): pretrained timm hrnet_w18 backbone has no in-script Pallas
    # equivalent; this only reproduces its output channels/strides.
    (w0, b0), (wb, bb), *rest = backbone_params
    merged = [(jnp.concatenate([w0, wb], axis=1),
               jnp.concatenate([b0, bb], axis=0))] + list(rest)
    feats = []
    for (w, b), s in zip(merged, FUSE_STRIDES):
        f = x_nhwc
        if s > 1:
            bsz, fh, fw, fc = f.shape
            f = f.reshape(bsz, fh // s, s, fw // s, s, fc).mean(axis=(2, 4))
        f = jax.nn.relu(jnp.einsum("bhwc,co->bhwo", f, w,
                                   precision=jax.lax.Precision.HIGHEST) + b)
        feats.append(f.astype(jnp.bfloat16))
    return feats


def init_params(key, in_image_chann=3):
    keys = jax.random.split(key, 2 * len(HRNET_W18_FEATURE_CHANNELS) + 4)
    backbone = []
    for i, c in enumerate(HRNET_W18_FEATURE_CHANNELS):
        w = jax.random.normal(keys[2 * i], (in_image_chann, c), jnp.float32) * 0.1
        b = jax.random.normal(keys[2 * i + 1], (c,), jnp.float32) * 0.01
        backbone.append((w, b))
    k = 2 * len(HRNET_W18_FEATURE_CHANNELS)
    # fuse: Conv2d(334, 64, 1, 1) -> ReLU -> Conv2d(64, 2, 1, 1)
    w1 = jax.random.normal(keys[k + 0], (IN_CHANN, OUT_CHANN), jnp.float32) * 0.05
    b1 = jax.random.normal(keys[k + 1], (OUT_CHANN,), jnp.float32) * 0.01
    w2 = jax.random.normal(keys[k + 2], (OUT_CHANN, FINAL_CHANN), jnp.float32) * 0.05
    b2 = jax.random.normal(keys[k + 3], (FINAL_CHANN,), jnp.float32) * 0.01
    return {"backbone": backbone, "w1": w1, "b1": b1, "w2": w2, "b2": b2}


def hrnet_forward(x_nchw, params):
    """Mirrors HRnet.forward: features -> upsample -> cat -> fuse (all fused)."""
    x = jnp.transpose(x_nchw, (0, 2, 3, 1))                  # NCHW -> NHWC
    bsz, height, width, _ = x.shape
    feats = _standin_backbone(x, params["backbone"])

    # Flatten every feature to (B, rows, C) at NATIVE resolution — both the
    # W- and H-axis nearest upsamples happen inside the kernel.
    feats_flat = [f.reshape(f.shape[0], f.shape[1] * f.shape[2], f.shape[3])
                  for f in feats]

    w1_parts = [params["w1"][o:o + c, :].astype(jnp.bfloat16)
                for o, c in zip(FUSE_OFFSETS, FUSE_CHANNELS)]
    out = fuse_pallas(
        feats_flat, w1_parts,
        params["b1"][None, :], params["w2"].astype(jnp.bfloat16),
        params["b2"][None, :], height=height, width=width)
    out = out.reshape(bsz, height, width, FINAL_CHANN)
    return jnp.transpose(out, (0, 3, 1, 2))                  # NHWC -> NCHW


def _reference_forward(x_nchw, params):
    """Pure-JAX reference: explicit upsample + concat + fuse, same bf16 inputs."""
    x = jnp.transpose(x_nchw, (0, 2, 3, 1))
    feats = _standin_backbone(x, params["backbone"])
    ups = []
    for f, s in zip(feats, FUSE_STRIDES):
        if s > 1:
            f = jnp.repeat(jnp.repeat(f, s, axis=1), s, axis=2)
        ups.append(f.astype(jnp.float32))
    y = jnp.concatenate(ups, axis=-1)                        # (B, H, W, 334)
    w1 = params["w1"].astype(jnp.bfloat16).astype(jnp.float32)
    h = jnp.maximum(
        jnp.einsum("bhwc,co->bhwo", y, w1,
                   precision=jax.lax.Precision.HIGHEST) + params["b1"], 0.0)
    h = h.astype(jnp.bfloat16).astype(jnp.float32)
    w2 = params["w2"].astype(jnp.bfloat16).astype(jnp.float32)
    out = jnp.einsum("bhwc,co->bhwo", h, w2,
                     precision=jax.lax.Precision.HIGHEST) + params["b2"]
    return jnp.transpose(out, (0, 3, 1, 2))


if __name__ == "__main__":
    key = jax.random.PRNGKey(0)
    k_param, k_x = jax.random.split(key)

    B, C_IMG, H, W = 2, 3, 16, 16
    x = jax.random.normal(k_x, (B, C_IMG, H, W), jnp.float32)
    params = init_params(k_param, in_image_chann=C_IMG)

    y = jax.jit(hrnet_forward)(x, params)
    y = jax.block_until_ready(y)
    assert y.shape == (B, FINAL_CHANN, H, W), y.shape
    assert y.dtype == jnp.float32

    # Cross-check the fused Pallas head against a pure-JAX reference that uses
    # the same bf16-rounded features / weights (f32 accumulation in both), at a
    # tolerance much tighter than bf16 rounding itself.
    ref = _reference_forward(x, params)
    max_err = float(jnp.max(jnp.abs(y - ref)))
    assert jnp.allclose(y, ref, atol=5e-3, rtol=5e-3), max_err

    print("KERNEL_OK")
</pallas_src>

<mosaic_0001>
module attributes {stable_mosaic.version = 11 : i64} {
  func.func @_fuse_kernel(%arg0: i32, %arg1: i32, %arg2: memref<1x256x82xbf16, #tpu.memory_space<vmem>>, %arg3: memref<1x64x36xbf16, #tpu.memory_space<vmem>>, %arg4: memref<1x16x72xbf16, #tpu.memory_space<vmem>>, %arg5: memref<1x4x144xbf16, #tpu.memory_space<vmem>>, %arg6: memref<82x64xbf16, #tpu.memory_space<vmem>>, %arg7: memref<36x64xbf16, #tpu.memory_space<vmem>>, %arg8: memref<72x64xbf16, #tpu.memory_space<vmem>>, %arg9: memref<144x64xbf16, #tpu.memory_space<vmem>>, %arg10: memref<1x64xf32, #tpu.memory_space<vmem>>, %arg11: memref<64x2xbf16, #tpu.memory_space<vmem>>, %arg12: memref<1x2xf32, #tpu.memory_space<vmem>>, %arg13: memref<1x256x2xf32, #tpu.memory_space<vmem>>) attributes {dimension_semantics = [#tpu.dimension_semantics<parallel>, #tpu.dimension_semantics<parallel>], iteration_bounds = array<i64: 2, 1>, scalar_prefetch = 0 : i64, scratch_operands = 0 : i64, tpu.core_type = #tpu.core_type<tc>, window_params = [{transform_indices = @transform_0, window_bounds = array<i64: 1, 256, 82>}, {transform_indices = @transform_1, window_bounds = array<i64: 1, 64, 36>}, {transform_indices = @transform_2, window_bounds = array<i64: 1, 16, 72>}, {transform_indices = @transform_3, window_bounds = array<i64: 1, 4, 144>}, {pipeline_mode = #tpu.pipeline_mode<synchronous>, transform_indices = @transform_4, window_bounds = array<i64: 82, 64>}, {pipeline_mode = #tpu.pipeline_mode<synchronous>, transform_indices = @transform_5, window_bounds = array<i64: 36, 64>}, {pipeline_mode = #tpu.pipeline_mode<synchronous>, transform_indices = @transform_6, window_bounds = array<i64: 72, 64>}, {pipeline_mode = #tpu.pipeline_mode<synchronous>, transform_indices = @transform_7, window_bounds = array<i64: 144, 64>}, {pipeline_mode = #tpu.pipeline_mode<synchronous>, transform_indices = @transform_8, window_bounds = array<i64: 1, 64>}, {pipeline_mode = #tpu.pipeline_mode<synchronous>, transform_indices = @transform_9, window_bounds = array<i64: 64, 2>}, {pipeline_mode = #tpu.pipeline_mode<synchronous>, transform_indices = @transform_10, window_bounds = array<i64: 1, 2>}, {transform_indices = @transform_11, window_bounds = array<i64: 1, 256, 2>}]} {
    %c0 = arith.constant 0 : index
    %c0_0 = arith.constant 0 : index
    %c0_1 = arith.constant 0 : index
    %0 = vector.load %arg5[%c0, %c0_0, %c0_1] : memref<1x4x144xbf16, #tpu.memory_space<vmem>>, vector<1x4x144xbf16>
    %1 = vector.shape_cast %0 : vector<1x4x144xbf16> to vector<4x144xbf16>
    %c0_2 = arith.constant 0 : index
    %c0_3 = arith.constant 0 : index
    %2 = vector.load %arg9[%c0_2, %c0_3] : memref<144x64xbf16, #tpu.memory_space<vmem>>, vector<144x64xbf16>
    %cst = arith.constant dense<0.000000e+00> : vector<4x64xf32>
    %3 = tpu.matmul %1, %2, %cst {dimension_numbers = #tpu.dot_dimension_numbers<[1], [0], [0], [1], [0, 0, 1, 1], [], []>} : vector<4x144xbf16>, vector<144x64xbf16>, vector<4x64xf32> -> vector<4x64xf32>
    %4 = vector.shape_cast %3 : vector<4x64xf32> to vector<4x1x64xf32>
    %5 = vector.shape_cast %4 : vector<4x1x64xf32> to vector<4x1x64xf32>
    %6 = vector.broadcast %5 : vector<4x1x64xf32> to vector<4x2x64xf32>
    %7 = vector.shape_cast %6 : vector<4x2x64xf32> to vector<8x64xf32>
    %8 = vector.shape_cast %7 : vector<8x64xf32> to vector<2x1x4x64xf32>
    %9 = vector.shape_cast %8 : vector<2x1x4x64xf32> to vector<2x1x4x64xf32>
    %10 = vector.broadcast %9 : vector<2x1x4x64xf32> to vector<2x2x4x64xf32>
    %11 = vector.shape_cast %10 : vector<2x2x4x64xf32> to vector<16x64xf32>
    %c0_4 = arith.constant 0 : index
    %c0_5 = arith.constant 0 : index
    %c0_6 = arith.constant 0 : index
    %12 = vector.load %arg4[%c0_4, %c0_5, %c0_6] : memref<1x16x72xbf16, #tpu.memory_space<vmem>>, vector<1x16x72xbf16>
    %13 = vector.shape_cast %12 : vector<1x16x72xbf16> to vector<16x72xbf16>
    %c0_7 = arith.constant 0 : index
    %c0_8 = arith.constant 0 : index
    %14 = vector.load %arg8[%c0_7, %c0_8] : memref<72x64xbf16, #tpu.memory_space<vmem>>, vector<72x64xbf16>
    %cst_9 = arith.constant dense<0.000000e+00> : vector<16x64xf32>
    %15 = tpu.matmul %13, %14, %cst_9 {dimension_numbers = #tpu.dot_dimension_numbers<[1], [0], [0], [1], [0, 0, 1, 1], [], []>} : vector<16x72xbf16>, vector<72x64xbf16>, vector<16x64xf32> -> vector<16x64xf32>
    %16 = arith.addf %11, %15 : vector<16x64xf32>
    %17 = vector.shape_cast %16 : vector<16x64xf32> to vector<16x1x64xf32>
    %18 = vector.shape_cast %17 : vector<16x1x64xf32> to vector<16x1x64xf32>
    %19 = vector.broadcast %18 : vector<16x1x64xf32> to vector<16x2x64xf32>
    %20 = vector.shape_cast %19 : vector<16x2x64xf32> to vector<32x64xf32>
    %21 = vector.shape_cast %20 : vector<32x64xf32> to vector<4x1x8x64xf32>
    %22 = vector.shape_cast %21 : vector<4x1x8x64xf32> to vector<4x1x8x64xf32>
    %23 = vector.broadcast %22 : vector<4x1x8x64xf32> to vector<4x2x8x64xf32>
    %24 = vector.shape_cast %23 : vector<4x2x8x64xf32> to vector<64x64xf32>
    %c0_10 = arith.constant 0 : index
    %c0_11 = arith.constant 0 : index
    %c0_12 = arith.constant 0 : index
    %25 = vector.load %arg3[%c0_10, %c0_11, %c0_12] : memref<1x64x36xbf16, #tpu.memory_space<vmem>>, vector<1x64x36xbf16>
    %26 = vector.shape_cast %25 : vector<1x64x36xbf16> to vector<64x36xbf16>
    %c0_13 = arith.constant 0 : index
    %c0_14 = arith.constant 0 : index
    %27 = vector.load %arg7[%c0_13, %c0_14] : memref<36x64xbf16, #tpu.memory_space<vmem>>, vector<36x64xbf16>
    %cst_15 = arith.constant dense<0.000000e+00> : vector<64x64xf32>
    %28 = tpu.matmul %26, %27, %cst_15 {dimension_numbers = #tpu.dot_dimension_numbers<[1], [0], [0], [1], [0, 0, 1, 1], [], []>} : vector<64x36xbf16>, vector<36x64xbf16>, vector<64x64xf32> -> vector<64x64xf32>
    %29 = arith.addf %24, %28 : vector<64x64xf32>
    %30 = vector.shape_cast %29 : vector<64x64xf32> to vector<64x1x64xf32>
    %31 = vector.shape_cast %30 : vector<64x1x64xf32> to vector<64x1x64xf32>
    %32 = vector.broadcast %31 : vector<64x1x64xf32> to vector<64x2x64xf32>
    %33 = vector.shape_cast %32 : vector<64x2x64xf32> to vector<128x64xf32>
    %34 = vector.shape_cast %33 : vector<128x64xf32> to vector<8x1x16x64xf32>
    %35 = vector.shape_cast %34 : vector<8x1x16x64xf32> to vector<8x1x16x64xf32>
    %36 = vector.broadcast %35 : vector<8x1x16x64xf32> to vector<8x2x16x64xf32>
    %37 = vector.shape_cast %36 : vector<8x2x16x64xf32> to vector<256x64xf32>
    %c0_16 = arith.constant 0 : index
    %c0_17 = arith.constant 0 : index
    %c0_18 = arith.constant 0 : index
    %38 = vector.load %arg2[%c0_16, %c0_17, %c0_18] : memref<1x256x82xbf16, #tpu.memory_space<vmem>>, vector<1x256x82xbf16>
    %39 = vector.shape_cast %38 : vector<1x256x82xbf16> to vector<256x82xbf16>
    %c0_19 = arith.constant 0 : index
    %c0_20 = arith.constant 0 : index
    %40 = vector.load %arg6[%c0_19, %c0_20] : memref<82x64xbf16, #tpu.memory_space<vmem>>, vector<82x64xbf16>
    %cst_21 = arith.constant dense<0.000000e+00> : vector<256x64xf32>
    %41 = tpu.matmul %39, %40, %cst_21 {dimension_numbers = #tpu.dot_dimension_numbers<[1], [0], [0], [1], [0, 0, 1, 1], [], []>} : vector<256x82xbf16>, vector<82x64xbf16>, vector<256x64xf32> -> vector<256x64xf32>
    %42 = arith.addf %37, %41 : vector<256x64xf32>
    %c0_22 = arith.constant 0 : index
    %c0_23 = arith.constant 0 : index
    %43 = vector.load %arg10[%c0_22, %c0_23] : memref<1x64xf32, #tpu.memory_space<vmem>>, vector<1x64xf32>
    %44 = vector.broadcast %43 : vector<1x64xf32> to vector<256x64xf32>
    %45 = arith.addf %42, %44 : vector<256x64xf32>
    %cst_24 = arith.constant 0.000000e+00 : f32
    %46 = vector.broadcast %cst_24 : f32 to vector<256x64xf32>
    %47 = arith.maximumf %45, %46 : vector<256x64xf32>
    %48 = arith.truncf %47 : vector<256x64xf32> to vector<256x64xbf16>
    %c0_25 = arith.constant 0 : index
    %c0_26 = arith.constant 0 : index
    %49 = vector.load %arg11[%c0_25, %c0_26] : memref<64x2xbf16, #tpu.memory_space<vmem>>, vector<64x2xbf16>
    %cst_27 = arith.constant dense<0.000000e+00> : vector<256x2xf32>
    %50 = tpu.matmul %48, %49, %cst_27 {dimension_numbers = #tpu.dot_dimension_numbers<[1], [0], [0], [1], [0, 0, 1, 1], [], []>} : vector<256x64xbf16>, vector<64x2xbf16>, vector<256x2xf32> -> vector<256x2xf32>
    %c0_28 = arith.constant 0 : index
    %c0_29 = arith.constant 0 : index
    %51 = vector.load %arg12[%c0_28, %c0_29] : memref<1x2xf32, #tpu.memory_space<vmem>>, vector<1x2xf32>
    %52 = vector.broadcast %51 : vector<1x2xf32> to vector<256x2xf32>
    %53 = arith.addf %50, %52 : vector<256x2xf32>
    %c0_30 = arith.constant 0 : index
    %c0_31 = arith.constant 0 : index
    %c0_32 = arith.constant 0 : index
    %54 = vector.load %arg13[%c0_30, %c0_31, %c0_32] : memref<1x256x2xf32, #tpu.memory_space<vmem>>, vector<1x256x2xf32>
    %55 = vector.shape_cast %54 : vector<1x256x2xf32> to vector<256x2xf32>
    %56 = vector.shape_cast %53 : vector<256x2xf32> to vector<1x256x2xf32>
    tpu.vector_store %arg13[%c0_30, %c0_31, %c0_32], %56 {strides = array<i32>} : memref<1x256x2xf32, #tpu.memory_space<vmem>>, vector<1x256x2xf32>,
    return
  }
  func.func @transform_0(%arg0: i32, %arg1: i32) -> (i32, i32, i32) {
    %c0_i32 = arith.constant 0 : i32
    %c0_i32_0 = arith.constant 0 : i32
    return %arg0, %arg1, %c0_i32 : i32, i32, i32
  }
  func.func @transform_1(%arg0: i32, %arg1: i32) -> (i32, i32, i32) {
    %c0_i32 = arith.constant 0 : i32
    %c0_i32_0 = arith.constant 0 : i32
    return %arg0, %arg1, %c0_i32 : i32, i32, i32
  }
  func.func @transform_2(%arg0: i32, %arg1: i32) -> (i32, i32, i32) {
    %c0_i32 = arith.constant 0 : i32
    %c0_i32_0 = arith.constant 0 : i32
    return %arg0, %arg1, %c0_i32 : i32, i32, i32
  }
  func.func @transform_3(%arg0: i32, %arg1: i32) -> (i32, i32, i32) {
    %c0_i32 = arith.constant 0 : i32
    %c0_i32_0 = arith.constant 0 : i32
    return %arg0, %arg1, %c0_i32 : i32, i32, i32
  }
  func.func @transform_4(%arg0: i32, %arg1: i32) -> (i32, i32) {
    %c0_i32 = arith.constant 0 : i32
    %c0_i32_0 = arith.constant 0 : i32
    %c0_i32_1 = arith.constant 0 : i32
    return %c0_i32, %c0_i32_0 : i32, i32
  }
  func.func @transform_5(%arg0: i32, %arg1: i32) -> (i32, i32) {
    %c0_i32 = arith.constant 0 : i32
    %c0_i32_0 = arith.constant 0 : i32
    %c0_i32_1 = arith.constant 0 : i32
    return %c0_i32, %c0_i32_0 : i32, i32
  }
  func.func @transform_6(%arg0: i32, %arg1: i32) -> (i32, i32) {
    %c0_i32 = arith.constant 0 : i32
    %c0_i32_0 = arith.constant 0 : i32
    %c0_i32_1 = arith.constant 0 : i32
    return %c0_i32, %c0_i32_0 : i32, i32
  }
  func.func @transform_7(%arg0: i32, %arg1: i32) -> (i32, i32) {
    %c0_i32 = arith.constant 0 : i32
    %c0_i32_0 = arith.constant 0 : i32
    %c0_i32_1 = arith.constant 0 : i32
    return %c0_i32, %c0_i32_0 : i32, i32
  }
  func.func @transform_8(%arg0: i32, %arg1: i32) -> (i32, i32) {
    %c0_i32 = arith.constant 0 : i32
    %c0_i32_0 = arith.constant 0 : i32
    %c0_i32_1 = arith.constant 0 : i32
    return %c0_i32, %c0_i32_0 : i32, i32
  }
  func.func @transform_9(%arg0: i32, %arg1: i32) -> (i32, i32) {
    %c0_i32 = arith.constant 0 : i32
    %c0_i32_0 = arith.constant 0 : i32
    %c0_i32_1 = arith.constant 0 : i32
    return %c0_i32, %c0_i32_0 : i32, i32
  }
  func.func @transform_10(%arg0: i32, %arg1: i32) -> (i32, i32) {
    %c0_i32 = arith.constant 0 : i32
    %c0_i32_0 = arith.constant 0 : i32
    %c0_i32_1 = arith.constant 0 : i32
    return %c0_i32, %c0_i32_0 : i32, i32
  }
  func.func @transform_11(%arg0: i32, %arg1: i32) -> (i32, i32, i32) {
    %c0_i32 = arith.constant 0 : i32
    %c0_i32_0 = arith.constant 0 : i32
    return %arg0, %arg1, %c0_i32 : i32, i32, i32
  }
}

</mosaic_0001>

<bundles_post_ra>
// kernel: hrnet_forward.1
= control target key start
LH: loop header
LB: loop body
LE: loop exit
PB: predicated region body
PF: predicated region fallthrough
CT: control target
= control target key end

     0   :  { %s3542_s17 = smov 0   ;;  %s3544_s18 = smov 0   ;;  %s4997_s0 = inlined_call_operand.vmem [shape: bf16[2,256,82], index: 0, kind: input, shape index: {}]   ;;  %s4998_s1 = inlined_call_operand.vmem [shape: bf16[2,64,36], index: 1, kind: input, shape index: {}]   ;;  %s4999_s2 = inlined_call_operand.vmem [shape: bf16[2,16,72], index: 2, kind: input, shape index: {}]   ;;  %s5000_s3 = inlined_call_operand.vmem [shape: bf16[2,4,144], index: 3, kind: input, shape index: {}]   ;;  %s5001_s4 = inlined_call_operand.vmem [shape: bf16[82,64], index: 4, kind: input, shape index: {}]   ;;  %s5002_s5 = inlined_call_operand.vmem [shape: bf16[36,64], index: 5, kind: input, shape index: {}]   ;;  %s5003_s6 = inlined_call_operand.vmem [shape: bf16[72,64], index: 6, kind: input, shape index: {}]   ;;  %s5004_s7 = inlined_call_operand.vmem [shape: bf16[144,64], index: 7, kind: input, shape index: {}]   ;;  %s5005_s8 = inlined_call_operand.vmem [shape: f32[1,64], index: 8, kind: input, shape index: {}]   ;;  %s5006_s9 = inlined_call_operand.vmem [shape: bf16[64,2], index: 9, kind: input, shape index: {}]   ;;  %s5007_s10 = inlined_call_operand.vmem [shape: f32[1,2], index: 10, kind: input, shape index: {}]   ;;  %s5008_s11 = inlined_call_operand.vmem [shape: f32[2,256,2], index: 11, kind: output, shape index: {}]  }
   0x1   :  { %s3546_s19 = smov 0  }
   0x2 LB: > { %s33_s20 = sadd.s32 1, %s3476_s18  ;;  %p3139_p0 = scmp.ge.s32.totalorder %s3480_s19, 1  ;;  %s3480_s19 = sphi %s3546_s19, %s21_s19   ;;  %s3476_s18 = sphi %s3544_s18, %s5012_s18   ;;  %s3472_s17 = sphi %s3542_s17, %s5011_s17  }
   0x3   : > { %p35_p1 = scmp.ge.s32.totalorder %s33_s20, 2  ;;  %p408_p2 = scmp.lt.s32.totalorder %s3480_s19, 3 }
   0x5   : > { %s5014_s20 = smov (%p35_p1, %s33_s20), 0  ;;  %p409_p3 = pnand %p3139_p0, %p408_p2 }
   0x6   : > { %p484_p4 = scmp.lt.s32.totalorder (!%p409_p3), %s3472_s17, 1 }
   0x7   : > { %412 = sbr.rel (%p409_p3) target bundleno = 666 (0x29a), region = 64 }
   0xc   : > { %v3382_v0 = vld [vmem:[%s5004_s7 + $0x38] sm:$0xff]  ;;  %v877_v1 = vld [vmem:[%s5002_s5 + $0x10] sm:$0x3]  ;;  %v1568_v3 = vld [vmem:[%s5001_s4 + $0x28] sm:$0x1]  ;;  %vm775_vm0 = vcmask 1041408  }
   0xd   : > { %v907_v2 = vunpack.c.l.b16 %v877_v1  ;;  %614 = vmatpush.bf16.msra.mxu0 %v3382_v0  ;;  %v1670_v4 = vunpack.c.l.b16 %v1568_v3  ;;  %v3381_v5 = vld [vmem:[%s5004_s7 + $0x30] sm:$0xff]  ;;  %vm771_vm1 = vcmask 1040384   ;;  %s5016_s17 = smov (!%p484_p4, %s3472_s17), 1  ;;  %v662_v8 = vld [vmem:[%s5003_s6 + $0x20] sm:$0xf]  ;;  %v3394_v12 = vld [vmem:[%s5002_s5 + $0x8] sm:$0xff] }
   0xe   : > { %v685_v10 = vunpack.c.l.b16 %v662_v8  ;;  %v3380_v13 = vld [vmem:[%s5004_s7 + $0x28] sm:$0xff]  ;;  %vm699_vm2 = vcmask 1043456   ;;  %v3415_v14 = vld [vmem:[%s5001_s4 + $0x20] sm:$0xff]  ;;  %s3371_s22 = sshll.u32 %s5016_s17, 5  ;;  %s3373_s23 = sshll.u32 %s5016_s17, 2  ;;  %v3414_v20 = vld [vmem:[%s5001_s4 + $0x18] sm:$0xff] }
   0xf   : > { %v910_v6 = vpack.c.b16 %v907_v2, %v907_v2  ;;  %v1676_v7 = vpack.c.b16 %v1670_v4, %v1670_v4  ;;  %s521_s26 = scalar_lea.vmem %s5000_s3, %s3373_s23  ;;  %v3393_v18 = vld [vmem:[%s5002_s5] sm:$0xff]  ;;  %s3602_s14 = scalar_lea.vmem %s4998_s1, %s3371_s22  ;;  %v3388_v21 = vld [vmem:[%s5003_s6 + $0x18] sm:$0xff]  ;;  %vm913_vm3 = vcmask 293888   ;;  %v3413_v24 = vld [vmem:[%s5001_s4 + $0x10] sm:$0xff]  ;;  %vm1682_vm4 = vcmask 670720  }
  0x10   : > { %v690_v15 = vpack.c.b16 %v685_v10, %v685_v10  ;;  %v533_v17 = vld [vmem:[%s521_s26] sm:$0xf]  ;;  %v3378_v23 = vld [vmem:[%s5004_s7 + $0x18] sm:$0xff]  ;;  %v3387_v25 = vld [vmem:[%s5003_s6 + $0x10] sm:$0xff]  ;;  %s3370_s21 = sshll.u32 %s5016_s17, 7  ;;  %s3372_s23 = sshll.u32 %s5016_s17, 3 }
  0x11   : > { %v927_v9 = vsel %vm775_vm0, %v910_v6, 0  ;;  %v1732_v11 = vsel %vm771_vm1, %v1676_v7, 0  ;;  %615 = vmatpush.bf16.msra.mxu0 %v3381_v5  ;;  %v3379_v19 = vld [vmem:[%s5004_s7 + $0x20] sm:$0xff]  ;;  %553 = vst [vmem:[#allocation1] ss:$4 sm:$0xff] %v533_v17  ;;  %v3377_v26 = vld [vmem:[%s5004_s7 + $0x10] sm:$0xff]  ;;  %s3641_s29 = scalar_lea.vmem %s4997_s0, %s3370_s21  ;;  %s511_s16 = scalar_lea.vmem %s4999_s2, %s3372_s23 }
  0x12   : > { %934 = vmatpush.bf16.msra.mxu3 %v927_v9  ;;  %1736 = vmatpush.bf16.msra.mxu1 %v1732_v11  ;;  %v701_v16 = vsel %vm699_vm2, %v690_v15, 0  ;;  %v3389_v22 = vld [vmem:[%s3602_s14] sm:$0xff]  ;;  %v3412_v27 = vld [vmem:[%s5001_s4 + $0x8] sm:$0xff]  ;;  %vm695_vm5 = vcmask 588800   ;;  %v3391_v39 = vld [vmem:[%s3602_s14 + $0x10] sm:$0xff]  ;;  %vm611_vm6 = vcmask 130048  }
  0x13   : > { %706 = vmatpush.bf16.msra.mxu2 %v701_v16  ;;  %v3386_v28 = vld [vmem:[%s5003_s6 + $0x8] sm:$0xff]  ;;  %v3411_v30 = vld [vmem:[%s5001_s4] sm:$0xff]  ;;  %v3397_v41 = vld [vmem:[%s3641_s29 + $0x10] sm:$0xff]  ;;  %vm777_vm7 = vcmask 1041409   ;;  %vm779_vm8 = vcmask 1043459   ;;  %vm781_vm9 = vcmask 1042433  }
  0x14   : > { %v3376_v29 = vld [vmem:[%s5004_s7 + $0x8] sm:$0xff]  ;;  %v3385_v31 = vld [vmem:[%s5003_s6] sm:$0xff]  ;;  %v3392_v42 = vld [vmem:[%s3602_s14 + $0x18] sm:$0xff]  ;;  %vm773_vm10 = vcmask 1042434   ;;  %vm2820_vm11 = vcmask 523264   ;;  %s3374_s22 = sshll.u32 %s5016_s17, 8 }
  0x15   : > { %616 = vmatpush.bf16.msra.mxu0 %v3380_v13  ;;  %v3395_v32 = vld [vmem:[%s3641_s29] sm:$0xff]  ;;  %v3390_v36 = vld [vmem:[%s3602_s14 + $0x8] sm:$0xff]  ;;  %v3398_v43 = vld [vmem:[%s3641_s29 + $0x18] sm:$0xff]  ;;  %s4664_s23 = scalar_lea.vmem %s5008_s11, %s3374_s22  ;;  %vm2958_vm12 = vcmask 15360  }
  0x16   : > { %935 = vmatpush.bf16.msra.mxu3 %v3394_v12  ;;  %1737 = vmatpush.bf16.msra.mxu1 %v3415_v14  ;;  %v3375_v33 = vld [vmem:[%s5004_s7] sm:$0xff]  ;;  %v3396_v38 = vld [vmem:[%s3641_s29 + $0x8] sm:$0xff]  ;;  %v3405_v44 = vld [vmem:[%s3641_s29 + $0x50] sm:$0xff] }
  0x17   : > { %707 = vmatpush.bf16.msra.mxu2 %v3388_v21  ;;  %v3384_v34 = vld [vmem:[%s511_s16] sm:$0xff]  ;;  %v3406_v46 = vld [vmem:[%s3641_s29 + $0x58] sm:$0xff]  ;;  %v3400_v47 = vld [vmem:[%s3641_s29 + $0x28] sm:$0xff] }
  0x18   : > { %v3383_v35 = vld [vmem:[%s5004_s7 + $0x40] sm:$0xff]  ;;  %v555_v40 = vld.sshfl [vmem:[#allocation1 + $0x8] sm:$0xff pattern:$0x73625140]  ;;  %v3401_v49 = vld [vmem:[%s3641_s29 + $0x30] sm:$0xff] }
  0x19   : > { %617 = vmatpush.bf16.msra.mxu0 %v3379_v19  ;;  %v554_v37 = vld.sshfl [vmem:[#allocation1] sm:$0xff pattern:$0x73625140]  ;;  %v3408_v50 = vld [vmem:[%s3641_s29 + $0x68] sm:$0xff]  ;;  %v3402_v51 = vld [vmem:[%s3641_s29 + $0x38] sm:$0xff] }
  0x1a   : > { %936 = vmatpush.bf16.msra.mxu3 %v3393_v18  ;;  %1738 = vmatpush.bf16.msra.mxu1 %v3414_v20  ;;  %v3399_v45 = vld [vmem:[%s3641_s29 + $0x20] sm:$0xff]  ;;  %v3409_v52 = vld [vmem:[%s3641_s29 + $0x70] sm:$0xff]  ;;  %v3410_v54 = vld [vmem:[%s3641_s29 + $0x78] sm:$0xff] }
  0x1b   : > { %708 = vmatpush.bf16.msra.mxu2 %v3387_v25  ;;  %v3407_v48 = vld [vmem:[%s3641_s29 + $0x60] sm:$0xff]  ;;  %v3404_v57 = vld [vmem:[%s3641_s29 + $0x48] sm:$0xff] }
  0x1c   : > { %v3403_v53 = vld [vmem:[%s3641_s29 + $0x40] sm:$0xff] }
  0x1d   : > { %3232 = vmatmul.msk.bf16.vlgmr.msra.gmra.mxu3 %vm913_vm3, %v3389_v22  ;;  %618 = vmatpush.bf16.msra.mxu0 %v3378_v23 }
  0x1e   : > { %3420 = vmatpush.bf16.msrb.mxu3 %v1732_v11  ;;  %1739 = vmatpush.bf16.msra.mxu1 %v3413_v24 }
  0x1f   : > { %709 = vmatpush.bf16.msra.mxu2 %v3386_v28 }
  0x21   : > { %619 = vmatpush.bf16.msra.mxu0 %v3377_v26 }
  0x22   : > { %3421 = vmatpush.bf16.msrb.mxu3 %v3415_v14  ;;  %1740 = vmatpush.bf16.msra.mxu1 %v3412_v27 }
  0x23   : > { %710 = vmatpush.bf16.msra.mxu2 %v3385_v31 }
  0x25   : > { %620 = vmatpush.bf16.msra.mxu0 %v3376_v29 }
  0x26   : > { %3422 = vmatpush.bf16.msrb.mxu3 %v3414_v20  ;;  %1741 = vmatpush.bf16.msra.mxu1 %v3411_v30 }
  0x27   : > { %3207 = vmatmul.msk.bf16.vlgmr.msra.gmra.mxu2 %vm695_vm5, %v3384_v34 }
  0x29   : > { %3320 = vmatmul.msk.bf16.vlgmr.msra.gmra.mxu1 %vm1682_vm4, %v3395_v32  ;;  %621 = vmatpush.bf16.msra.mxu0 %v3375_v33 }
  0x2a   : > { %3423 = vmatpush.bf16.msrb.mxu3 %v3413_v24 }
  0x2c   : > { %622 = vmatmul.bf16.vlgmr.msra.gmra.mxu0 %v554_v37 }
  0x2d   : > { %634 = vmatpush.bf16.msrb.mxu0 %v3383_v35  ;;  %3233 = vmatmul.msk.bf16.gmra.mxu3 %vm913_vm3, %v3390_v36 }
  0x2e   : > { %3424 = vmatpush.bf16.msrb.mxu3 %v3412_v27 }
  0x32   : > { %3425 = vmatpush.bf16.msrb.mxu3 %v3411_v30 }
  0x39   : > { %3321 = vmatmul.msk.bf16.gmra.mxu1 %vm1682_vm4, %v3396_v38 }
  0x3c   : > { %3186 = vmatmul.msk.bf16.vlgmr.msrb.gmra.mxu0 %vm611_vm6, %v555_v40  ;;  %v3745_v40 = vld [vmem:[%s5005_s8] ss:$0 sm:$0xff] }
  0x3d   : > { %3234 = vmatmul.msk.bf16.gmra.mxu3 %vm913_vm3, %v3391_v39 }
  0x49   : > { %3322 = vmatmul.msk.bf16.gmra.mxu1 %vm1682_vm4, %v3397_v41 }
  0x4d   : > { %3235 = vmatmul.msk.bf16.gmra.mxu3 %vm913_vm3, %v3392_v42 }
  0x59   : > { %3323 = vmatmul.msk.bf16.gmra.mxu1 %vm1682_vm4, %v3398_v43 }
  0x5d   : > { %3330 = vmatmul.msk.bf16.vlgmr.msrb.gmra.mxu3 %vm1682_vm4, %v3405_v44 }
  0x69   : > { %3324 = vmatmul.msk.bf16.gmra.mxu1 %vm1682_vm4, %v3399_v45 }
  0x6d   : > { %3331 = vmatmul.msk.bf16.gmra.mxu3 %vm1682_vm4, %v3406_v46 }
  0x79   : > { %3325 = vmatmul.msk.bf16.gmra.mxu1 %vm1682_vm4, %v3400_v47 }
  0x7d   : > { %3332 = vmatmul.msk.bf16.gmra.mxu3 %vm1682_vm4, %v3407_v48 }
  0x89   : > { %3326 = vmatmul.msk.bf16.gmra.mxu1 %vm1682_vm4, %v3401_v49 }
  0x8d   : > { %3333 = vmatmul.msk.bf16.gmra.mxu3 %vm1682_vm4, %v3408_v50 }
  0x99   : > { %3327 = vmatmul.msk.bf16.gmra.mxu1 %vm1682_vm4, %v3402_v51 }
  0x9d   : > { %3334 = vmatmul.msk.bf16.gmra.mxu3 %vm1682_vm4, %v3409_v52 }
  0xa0   : > { %v3708_v12 = vpop.f32.mrf.mxu3 }
  0xa1   : > { %v966_v20 = vrot.slane %v3708_v12, 2  ;;  %v968_v21 = vrot.slane %v3708_v12, 6  ;;  %v967_v29 = vrot.slane %v3708_v12, 4 }
  0xa6   : > { %v3695_v62 = vpop.f32.mrf.mxu1 }
  0xa7   : > { %v1856_v47 = vrot.slane %v3695_v62, 4 }
  0xa8   : > { %v3740_v36 = vpop.f32.mrf.mxu3 }
  0xa9   : > { %3328 = vmatmul.msk.bf16.gmra.mxu1 %vm1682_vm4, %v3403_v53  ;;  %v623_v55 = vpop.f32.mrf.mxu0  ;;  %v3759_v53 = vrot.slane %v3745_v40, 4 }
  0xaa   : > { %v712_v58 = vpop.f32.mrf.mxu2 }
  0xab   : > { %v720_v60 = vrot.slane %v712_v58, 4  ;;  %v719_v63 = vrot.slane %v712_v58, 2  ;;  %v721_v0 = vrot.slane %v712_v58, 6 }
  0xad   : > { %3335 = vmatmul.msk.bf16.gmra.mxu3 %vm1682_vm4, %v3410_v54 }
  0xae   : > { %v3723_v22 = vpop.f32.mrf.mxu1 }
  0xb1   : > { %v625_v56 = vpop.f32.mrf.mxu0 }
  0xb6   : > { %v3752_v48 = vpop.f32.mrf.mxu1 }
  0xb9   : > { %3329 = vmatmul.msk.bf16.gmra.mxu1 %vm1682_vm4, %v3404_v57  ;;  %v636_v59 = vpop.f32.mrf.mxu0 }
  0xba   : > { %v3693_v61 = vadd.f32 %v636_v59, %v623_v55 }
  0xbc   : > { %v641_v1 = vrot.slane %v3693_v61, 1  ;;  %v644_v2 = vperm.slane %v3693_v61, 0 }
  0xbe   : > { %v645_v3 = vperm.slane %v641_v1, 0  ;;  %v3699_v4 = vadd.f32 %v712_v58, %v644_v2  ;;  %v3701_v5 = vadd.f32 %v720_v60, %v644_v2 }
  0xc0   : > { %v732_v6 = vadd.f32 %v719_v63, %v645_v3  ;;  %v3703_v7 = vadd.f32 %v721_v0, %v645_v3  ;;  %v747_v8 = vrot.slane %v3699_v4, 1  ;;  %v748_v9 = vrot.slane %v3699_v4, 2 }
  0xc1   : > { %v749_v10 = vrot.slane %v3699_v4, 3  ;;  %v638_v11 = vpop.f32.mrf.mxu0 }
  0xc2   : > { %v750_v13 = vrot.slane %v732_v6, 1  ;;  %v751_v14 = vrot.slane %v732_v6, 2  ;;  %v752_v15 = vrot.slane %v732_v6, 3  ;;  %v778_v16 = vsel %vm777_vm7, %v3699_v4, %v747_v8 }
  0xc3   : > { %v780_v17 = vsel %vm779_vm8, %v748_v9, %v749_v10 }
  0xc4   : > { %v787_v18 = vsel %vm777_vm7, %v732_v6, %v750_v13  ;;  %v788_v19 = vsel %vm779_vm8, %v751_v14, %v752_v15  ;;  %v782_v23 = vsel %vm781_vm9, %v778_v16, %v780_v17  ;;  %v784_v26 = vsel %vm771_vm1, %v732_v6, %v750_v13 }
  0xc5   : > { %v789_v24 = vsel %vm781_vm9, %v787_v18, %v788_v19  ;;  %v783_v25 = vrot.slane %v782_v23, 1  ;;  %v785_v28 = vsel %vm773_vm10, %v751_v14, %v752_v15  ;;  %v1859_v13 = vrot.slane %v3723_v22, 4 }
  0xc6   : > { %v790_v27 = vrot.slane %v789_v24, 1  ;;  %v3735_v32 = vsel %vm775_vm0, %v784_v26, %v785_v28  ;;  %v1860_v28 = vrot.slane %v3723_v22, 6 }
  0xc7   : > { %v3730_v30 = vperm.slane %v783_v25, 0  ;;  %v835_v34 = vperm.slane %v3735_v32, 0 }
  0xc8   : > { %v3732_v31 = vperm.slane %v790_v27, 0  ;;  %v1858_v27 = vrot.slane %v3723_v22, 2 }
  0xc9   : > { %v1015_v33 = vadd.f32 %v966_v20, %v3730_v30  ;;  %v1016_v41 = vadd.f32 %v967_v29, %v835_v34  ;;  %v3780_v20 = vpop.f32.mrf.mxu3 }
  0xca   : > { %v1017_v35 = vadd.f32 %v968_v21, %v3732_v31 }
  0xcb   : > { %v1081_v37 = vrot.slane %v1015_v33, 1  ;;  %v1082_v38 = vrot.slane %v1015_v33, 2  ;;  %v1083_v39 = vrot.slane %v1015_v33, 3  ;;  %v1084_v50 = vrot.slane %v1016_v41, 1 }
  0xcc   : > { %v1087_v42 = vrot.slane %v1017_v35, 1  ;;  %v1088_v43 = vrot.slane %v1017_v35, 2  ;;  %v1089_v44 = vrot.slane %v1017_v35, 3  ;;  %v1085_v51 = vrot.slane %v1016_v41, 2 }
  0xcd   : > { %v1181_v45 = vsel %vm771_vm1, %v1015_v33, %v1081_v37  ;;  %v1182_v46 = vsel %vm773_vm10, %v1082_v38, %v1083_v39  ;;  %v1086_v54 = vrot.slane %v1016_v41, 3  ;;  %v1184_v56 = vsel %vm777_vm7, %v1015_v33, %v1081_v37  ;;  %v1750_v37 = vpop.f32.mrf.mxu1 }
  0xce   : > { %v3755_v49 = vsel %vm775_vm0, %v1181_v45, %v1182_v46  ;;  %v1195_v55 = vsel %vm771_vm1, %v1017_v35, %v1087_v42  ;;  %v1185_v57 = vsel %vm779_vm8, %v1082_v38, %v1083_v39  ;;  %v1188_v58 = vsel %vm771_vm1, %v1016_v41, %v1084_v50 }
  0xcf   : > { %v1400_v52 = vperm.slane %v3755_v49, 0  ;;  %v1196_v59 = vsel %vm773_vm10, %v1088_v43, %v1089_v44  ;;  %v1189_v63 = vsel %vm773_vm10, %v1085_v51, %v1086_v54  ;;  %v1191_v0 = vsel %vm777_vm7, %v1016_v41, %v1084_v50 }
  0xd0   : > { %v1198_v1 = vsel %vm777_vm7, %v1017_v35, %v1087_v42  ;;  %v1190_v2 = vsel %vm775_vm0, %v1188_v58, %v1189_v63  ;;  %v1192_v3 = vsel %vm779_vm8, %v1085_v51, %v1086_v54  ;;  %v1197_v6 = vsel %vm775_vm0, %v1195_v55, %v1196_v59 }
  0xd1   : > { %v2049_v60 = vadd.f32 %v1856_v47, %v1400_v52  ;;  %v1199_v11 = vsel %vm779_vm8, %v1088_v43, %v1089_v44  ;;  %v1186_v14 = vsel %vm781_vm9, %v1184_v56, %v1185_v57  ;;  %v1193_v16 = vsel %vm781_vm9, %v1191_v0, %v1192_v3 }
  0xd2   : > { %v1200_v17 = vsel %vm781_vm9, %v1198_v1, %v1199_v11  ;;  %v1402_v18 = vperm.slane %v1190_v2, 0  ;;  %v1404_v19 = vperm.slane %v1197_v6, 0  ;;  %v1194_v23 = vrot.slane %v1193_v16, 1  ;;  %v3800_v11 = vpop.f32.mrf.mxu3 }
  0xd3   : > { %v2187_v15 = vadd.f32 %v3759_v53, %v2049_v60  ;;  %v1201_v24 = vrot.slane %v1200_v17, 1  ;;  %v1187_v29 = vrot.slane %v1186_v14, 1  ;;  %v1855_v41 = vrot.slane %v3695_v62, 2 }
  0xd4   : > { %v2051_v25 = vadd.f32 %v3723_v22, %v1402_v18  ;;  %v2053_v26 = vadd.f32 %v1859_v13, %v1404_v19  ;;  %v1403_v33 = vperm.slane %v1194_v23, 0  ;;  %v3789_v42 = vrot.slane %v3745_v40, 6 }
  0xd5   : > { %v2315_v21 = vmax.f32 %v2187_v15, 0.0  ;;  %v1405_v35 = vperm.slane %v1201_v24, 0  ;;  %v3792_v45 = vrot.slane %v3745_v40, 2  ;;  %v1864_v22 = vrot.slane %v1750_v37, 2  ;;  %v3804_v15 = vpop.f32.mrf.mxu2 }
  0xd6   : > { %v2189_v38 = vadd.f32 %v3745_v40, %v2051_v25  ;;  %v2191_v39 = vadd.f32 %v3759_v53, %v2053_v26  ;;  %v2052_v43 = vadd.f32 %v1858_v27, %v1403_v33  ;;  %v1865_v46 = vrot.slane %v1750_v37, 4 }
  0xd7   : > { %2573 = vst [vmem:[#allocation1 + $0x2] ss:$4 sm:$0xff] %v2315_v21  ;;  %v2054_v44 = vadd.f32 %v1860_v28, %v1405_v35  ;;  %v1401_v51 = vperm.slane %v1187_v29, 0  ;;  %v1866_v54 = vrot.slane %v1750_v37, 6  ;;  %v1857_v57 = vrot.slane %v3695_v62, 6 }
  0xd8   : > { %v2317_v47 = vmax.f32 %v2189_v38, 0.0  ;;  %v2319_v50 = vmax.f32 %v2191_v39, 0.0  ;;  %v2190_v55 = vadd.f32 %v3792_v45, %v2052_v43  ;;  %v1862_v58 = vrot.slane %v3752_v48, 4 }
  0xd9   : > { %v2192_v56 = vadd.f32 %v3789_v42, %v2054_v44  ;;  %v2059_v59 = vadd.f32 %v1750_v37, %v1402_v18  ;;  %v2061_v60 = vadd.f32 %v1865_v46, %v1404_v19  ;;  %v2060_v63 = vadd.f32 %v1864_v22, %v1403_v33  ;;  %v3836_v46 = vpop.f32.mrf.mxu1 }
  0xda   : > { %2577 = vst [vmem:[#allocation1 + $0x20] ss:$4 sm:$0xff] %v2317_v47  ;;  %v2062_v0 = vadd.f32 %v1866_v54, %v1405_v35  ;;  %v2318_v1 = vmax.f32 %v2190_v55, 0.0  ;;  %v969_v3 = vrot.slane %v3740_v36, 2  ;;  %v970_v6 = vrot.slane %v3740_v36, 4 }
  0xdb   : > { %v2320_v2 = vmax.f32 %v2192_v56, 0.0  ;;  %2581 = vst [vmem:[#allocation1 + $0x22] ss:$4 sm:$0xff] %v2319_v50  ;;  %v643_v13 = vrot.slane %v3693_v61, 3  ;;  %v642_v14 = vrot.slane %v3693_v61, 2  ;;  %v971_v16 = vrot.slane %v3740_v36, 6 }
  0xdc   : > { %v2050_v17 = vadd.f32 %v1857_v57, %v1401_v51  ;;  %v2057_v18 = vadd.f32 %v1862_v58, %v1400_v52  ;;  %2579 = vst [vmem:[#allocation1 + $0x21] ss:$4 sm:$0xff] %v2318_v1  ;;  %v723_v19 = vrot.slane %v3804_v15, 4  ;;  %v1861_v21 = vrot.slane %v3752_v48, 2 }
  0xdd   : > { %v772_v23 = vsel %vm771_vm1, %v3699_v4, %v747_v8  ;;  %v2197_v61 = vadd.f32 %v3745_v40, %v2059_v59  ;;  %2583 = vst [vmem:[#allocation1 + $0x23] ss:$4 sm:$0xff] %v2320_v2  ;;  %v724_v24 = vrot.slane %v3804_v15, 6  ;;  %v1863_v25 = vrot.slane %v3752_v48, 6 }
  0xde   : > { %v2198_v49 = vadd.f32 %v3792_v45, %v2060_v63  ;;  %v2199_v52 = vadd.f32 %v3759_v53, %v2061_v60  ;;  %v2200_v26 = vadd.f32 %v3789_v42, %v2062_v0  ;;  %v3821_v27 = vperm.slane %v643_v13, 0  ;;  %v3847_v60 = vpop.f32.mrf.mxu3 }
  0xdf   : > { %v3823_v28 = vperm.slane %v642_v14, 0  ;;  %v774_v8 = vsel %vm773_vm10, %v748_v9, %v749_v10  ;;  %v1019_v29 = vadd.f32 %v969_v3, %v3730_v30  ;;  %v2058_v33 = vadd.f32 %v1863_v25, %v1401_v51 }
  0xe0   : > { %v2188_v35 = vadd.f32 %v3789_v42, %v2050_v17  ;;  %v3833_v37 = vadd.f32 %v3759_v53, %v2057_v18  ;;  %v776_v38 = vsel %vm775_vm0, %v772_v23, %v774_v8  ;;  %v2325_v39 = vmax.f32 %v2197_v61, 0.0 }
  0xe1   : > { %v833_v43 = vperm.slane %v776_v38, 0  ;;  %v1093_v44 = vrot.slane %v1019_v29, 1  ;;  %v1094_v22 = vrot.slane %v1019_v29, 2  ;;  %v2326_v47 = vmax.f32 %v2198_v49, 0.0 }
  0xe2   : > { %v2327_v4 = vmax.f32 %v2199_v52, 0.0  ;;  %v2328_v50 = vmax.f32 %v2200_v26, 0.0  ;;  %v1095_v9 = vrot.slane %v1019_v29, 3  ;;  %v1868_v58 = vrot.slane %v3836_v46, 4 }
  0xe3   : > { %v1014_v10 = vadd.f32 %v3708_v12, %v833_v43  ;;  %v1018_v30 = vadd.f32 %v3740_v36, %v833_v43  ;;  %v1209_v51 = vsel %vm771_vm1, %v1019_v29, %v1093_v44  ;;  %v1212_v54 = vsel %vm777_vm7, %v1019_v29, %v1093_v44 }
  0xe4   : > { %v3842_v55 = vld.sshfl [vmem:[#allocation1 + $0x20] sm:$0xff pattern:$0x73625140]  ;;  %v1210_v56 = vsel %vm773_vm10, %v1094_v22, %v1095_v9  ;;  %v1213_v57 = vsel %vm779_vm8, %v1094_v22, %v1095_v9  ;;  %v2316_v59 = vmax.f32 %v2188_v35, 0.0  ;;  %v1869_v9 = vrot.slane %v3836_v46, 6 }
  0xe5   : > { %2590 = vst [vmem:[#allocation1 + $0x20] ss:$4 sm:$0xff] %v2325_v39  ;;  %v1078_v63 = vrot.slane %v1014_v10, 1  ;;  %v1079_v12 = vrot.slane %v1014_v10, 2  ;;  %v1080_v0 = vrot.slane %v1014_v10, 3  ;;  %v1090_v1 = vrot.slane %v1018_v30, 1 }
  0xe6   : > { %2591 = vst [vmem:[#allocation1 + $0x21] ss:$4 sm:$0xff] %v2326_v47  ;;  %v1091_v2 = vrot.slane %v1018_v30, 2  ;;  %v1092_v3 = vrot.slane %v1018_v30, 3  ;;  %v3850_v13 = vsel %vm775_vm0, %v1209_v51, %v1210_v56  ;;  %v1214_v14 = vsel %vm781_vm9, %v1212_v54, %v1213_v57 }
  0xe7   : > { %2592 = vst [vmem:[#allocation1 + $0x22] ss:$4 sm:$0xff] %v2327_v4  ;;  %v1174_v17 = vsel %vm771_vm1, %v1014_v10, %v1078_v63  ;;  %v1175_v18 = vsel %vm773_vm10, %v1079_v12, %v1080_v0  ;;  %v1177_v23 = vsel %vm777_vm7, %v1014_v10, %v1078_v63  ;;  %v1178_v61 = vsel %vm779_vm8, %v1079_v12, %v1080_v0 }
  0xe8   : > { %2593 = vst [vmem:[#allocation1 + $0x23] ss:$4 sm:$0xff] %v2328_v50  ;;  %v1176_v25 = vsel %vm775_vm0, %v1174_v17, %v1175_v18  ;;  %v1179_v49 = vsel %vm781_vm9, %v1177_v23, %v1178_v61  ;;  %v1202_v52 = vsel %vm771_vm1, %v1018_v30, %v1090_v1  ;;  %v1203_v26 = vsel %vm773_vm10, %v1091_v2, %v1092_v3 }
  0xe9   : > { %v1180_v8 = vrot.slane %v1179_v49, 1  ;;  %v3862_v29 = vsel %vm775_vm0, %v1202_v52, %v1203_v26  ;;  %v1205_v35 = vsel %vm777_vm7, %v1018_v30, %v1090_v1  ;;  %v1206_v38 = vsel %vm779_vm8, %v1091_v2, %v1092_v3  ;;  %2575 = vst [vmem:[#allocation1 + $0x3] ss:$4 sm:$0xff] %v2316_v59  ;;  %v3916_v49 = vpop.f32.mrf.mxu1 }
  0xea   : > { %v1207_v39 = vsel %vm781_vm9, %v1205_v35, %v1206_v38  ;;  %v1215_v43 = vrot.slane %v1214_v14, 1  ;;  %v1398_v44 = vperm.slane %v1176_v25, 0  ;;  %v1406_v22 = vperm.slane %v3862_v29, 0 }
  0xeb   : > { %v1208_v47 = vrot.slane %v1207_v39, 1  ;;  %v1399_v4 = vperm.slane %v1180_v8, 0  ;;  %v1408_v50 = vperm.slane %v3850_v13, 0  ;;  %v3878_v56 = vadd.f32 %v3789_v42, %v2058_v33  ;;  %v3418_v39 = vld [vmem:[%s5006_s9 + $0x10] sm:$0xff] }
  0xec   : > { %v3870_v10 = vperm.slane %v1215_v43, 0  ;;  %v2047_v51 = vadd.f32 %v3695_v62, %v1398_v44  ;;  %v2055_v30 = vadd.f32 %v3752_v48, %v1398_v44  ;;  %v2063_v54 = vadd.f32 %v3836_v46, %v1406_v22  ;;  %v3897_v48 = vpop.f32.mrf.mxu3 }
  0xed   : > { %v3880_v57 = vperm.slane %v1208_v47, 0  ;;  %v2048_v59 = vadd.f32 %v1855_v41, %v1399_v4  ;;  %v2056_v63 = vadd.f32 %v1861_v21, %v1399_v4  ;;  %v1867_v12 = vrot.slane %v3836_v46, 2  ;;  %v3419_v41 = vld [vmem:[%s5006_s9 + $0x18] sm:$0xff] }
  0xee   : > { %v2065_v0 = vadd.f32 %v1868_v58, %v1408_v50  ;;  %v2066_v1 = vadd.f32 %v1869_v9, %v3870_v10  ;;  %v2185_v2 = vadd.f32 %v3745_v40, %v2047_v51  ;;  %v753_v33 = vrot.slane %v3701_v5, 1  ;;  %2873 = vmatpush.bf16.msra.mxu0 %v3419_v41  ;;  %3426 = vmatpush.bf16.msrb.mxu2 %v3419_v41 }
  0xef   : > { %v2186_v3 = vadd.f32 %v3792_v45, %v2048_v59  ;;  %v2193_v14 = vadd.f32 %v3745_v40, %v2055_v30  ;;  %v3895_v62 = vadd.f32 %v3745_v40, %v2063_v54  ;;  %v754_v21 = vrot.slane %v3701_v5, 2 }
  0xf0   : > { %v2064_v46 = vadd.f32 %v1867_v12, %v3880_v57  ;;  %v2194_v58 = vadd.f32 %v3792_v45, %v2056_v63  ;;  %v2313_v17 = vmax.f32 %v2185_v2, 0.0  ;;  %v755_v18 = vrot.slane %v3701_v5, 3  ;;  %v3417_v63 = vld [vmem:[%s5006_s9 + $0x8] sm:$0xff] }
  0xf1   : > { %v3909_v23 = vadd.f32 %v723_v19, %v3823_v28  ;;  %v3914_v61 = vadd.f32 %v724_v24, %v3821_v27  ;;  %v2314_v25 = vmax.f32 %v2186_v3, 0.0  ;;  %v2323_v52 = vmax.f32 %v3833_v37, 0.0 }
  0xf2   : > { %v2324_v26 = vmax.f32 %v3878_v56, 0.0  ;;  %v3921_v8 = vadd.f32 %v3759_v53, %v2065_v0  ;;  %v3924_v19 = vadd.f32 %v3789_v42, %v2066_v1  ;;  %2569 = vst [vmem:[#allocation1] ss:$4 sm:$0xff] %v2313_v17  ;;  %v2321_v35 = vmax.f32 %v2193_v14, 0.0  ;;  %2874 = vmatpush.bf16.msra.mxu0 %v3418_v39  ;;  %3427 = vmatpush.bf16.msrb.mxu2 %v3418_v39 }
  0xf3   : > { %v2329_v24 = vmax.f32 %v3895_v62, 0.0  ;;  %2571 = vst [vmem:[#allocation1 + $0x1] ss:$4 sm:$0xff] %v2314_v25  ;;  %v1020_v38 = vadd.f32 %v970_v6, %v835_v34  ;;  %v1021_v37 = vadd.f32 %v971_v16, %v3732_v31  ;;  %v3938_v43 = vadd.f32 %v3792_v45, %v2064_v46 }
  0xf4   : > { %v2322_v44 = vmax.f32 %v2194_v58, 0.0  ;;  %v1870_v47 = vrot.slane %v3916_v49, 2  ;;  %v1871_v4 = vrot.slane %v3916_v49, 4  ;;  %v765_v6 = vrot.slane %v3909_v23, 1  ;;  %v3962_v58 = vpop.f32.mrf.mxu3 }
  0xf5   : > { %v1096_v32 = vrot.slane %v1020_v38, 1  ;;  %v1097_v9 = vrot.slane %v1020_v38, 2  ;;  %v1098_v51 = vrot.slane %v1020_v38, 3  ;;  %v1099_v34 = vrot.slane %v1021_v37, 1 }
  0xf6   : > { %v1100_v36 = vrot.slane %v1021_v37, 2  ;;  %v1101_v31 = vrot.slane %v1021_v37, 3  ;;  %v766_v16 = vrot.slane %v3909_v23, 2  ;;  %2875 = vmatpush.bf16.msra.mxu0 %v3417_v63  ;;  %3428 = vmatpush.bf16.msrb.mxu2 %v3417_v63  ;;  %v3988_v63 = vpop.f32.mrf.mxu1 }
  0xf7   : > { %v1216_v30 = vsel %vm771_vm1, %v1020_v38, %v1096_v32  ;;  %v1217_v54 = vsel %vm773_vm10, %v1097_v9, %v1098_v51  ;;  %v1219_v56 = vsel %vm777_vm7, %v1020_v38, %v1096_v32  ;;  %v1220_v59 = vsel %vm779_vm8, %v1097_v9, %v1098_v51 }
  0xf8   : > { %v3952_v12 = vsel %vm775_vm0, %v1216_v30, %v1217_v54  ;;  %v1221_v0 = vsel %vm781_vm9, %v1219_v56, %v1220_v59  ;;  %v1223_v1 = vsel %vm771_vm1, %v1021_v37, %v1099_v34  ;;  %v1224_v2 = vsel %vm773_vm10, %v1100_v36, %v1101_v31 }
  0xf9   : > { %v1222_v3 = vrot.slane %v1221_v0, 1  ;;  %v3958_v14 = vsel %vm775_vm0, %v1223_v1, %v1224_v2  ;;  %v1226_v41 = vsel %vm777_vm7, %v1021_v37, %v1099_v34  ;;  %v1227_v46 = vsel %vm779_vm8, %v1100_v36, %v1101_v31  ;;  %v3994_v1 = vld.sshfl [vmem:[#allocation1 + $0x20] sm:$0xff pattern:$0x73625140] }
  0xfa   : > { %v3964_v17 = vld.sshfl [vmem:[#allocation1] sm:$0xff pattern:$0x73625140]  ;;  %v1228_v25 = vsel %vm781_vm9, %v1226_v41, %v1227_v46  ;;  %v1410_v38 = vperm.slane %v3952_v12, 0  ;;  %v1412_v39 = vperm.slane %v3958_v14, 0  ;;  %v767_v32 = vrot.slane %v3909_v23, 3 }
  0xfb   : > { %2586 = vst [vmem:[#allocation1] ss:$4 sm:$0xff] %v2321_v35  ;;  %v1229_v9 = vrot.slane %v1228_v25, 1  ;;  %v3970_v51 = vperm.slane %v1222_v3, 0  ;;  %v1872_v37 = vrot.slane %v3916_v49, 6  ;;  %v768_v34 = vrot.slane %v3914_v61, 1 }
  0xfc   : > { %2587 = vst [vmem:[#allocation1 + $0x1] ss:$4 sm:$0xff] %v2322_v44  ;;  %v2067_v36 = vadd.f32 %v3916_v49, %v1410_v38  ;;  %v2069_v31 = vadd.f32 %v1871_v4, %v1412_v39  ;;  %v769_v30 = vrot.slane %v3914_v61, 2  ;;  %v770_v54 = vrot.slane %v3914_v61, 3 }
  0xfd   : > { %2588 = vst [vmem:[#allocation1 + $0x2] ss:$4 sm:$0xff] %v2323_v52  ;;  %v3981_v35 = vperm.slane %v1229_v9, 0  ;;  %v2068_v56 = vadd.f32 %v1870_v47, %v3970_v51  ;;  %v819_v59 = vsel %vm771_vm1, %v3909_v23, %v765_v6  ;;  %v822_v44 = vsel %vm777_vm7, %v3909_v23, %v765_v6 }
  0xfe   : > { %2589 = vst [vmem:[#allocation1 + $0x3] ss:$4 sm:$0xff] %v2324_v26  ;;  %v2205_v49 = vadd.f32 %v3745_v40, %v2067_v36  ;;  %v2207_v4 = vadd.f32 %v3759_v53, %v2069_v31  ;;  %v820_v0 = vsel %vm773_vm10, %v766_v16, %v767_v32  ;;  %v823_v52 = vsel %vm779_vm8, %v766_v16, %v767_v32  ;;  %v3416_v26 = vld [vmem:[%s5006_s9] sm:$0xff] }
  0xff   : > { %v2070_v47 = vadd.f32 %v1872_v37, %v3981_v35  ;;  %v2206_v2 = vadd.f32 %v3792_v45, %v2068_v56  ;;  %v824_v3 = vsel %vm781_vm9, %v822_v44, %v823_v52  ;;  %v826_v23 = vsel %vm771_vm1, %v3914_v61, %v768_v34  ;;  %2876 = vmatpush.bf16.msra.mxu0 %v3416_v26 }
 0x100   : > { %v2331_v6 = vmax.f32 %v3921_v8, 0.0  ;;  %v2332_v41 = vmax.f32 %v3924_v19, 0.0  ;;  %v2333_v16 = vmax.f32 %v2205_v49, 0.0  ;;  %v827_v46 = vsel %vm773_vm10, %v769_v30, %v770_v54  ;;  %3429 = vmatpush.bf16.msrb.mxu2 %v3416_v26 }
 0x101   : > { %v2208_v25 = vadd.f32 %v3789_v42, %v2070_v47  ;;  %v2334_v32 = vmax.f32 %v2206_v2, 0.0  ;;  %v828_v9 = vsel %vm775_vm0, %v826_v23, %v827_v46  ;;  %v829_v37 = vsel %vm777_vm7, %v3914_v61, %v768_v34  ;;  %v955_v47 = vpop.f32.mrf.mxu3 }
 0x102   : > { %v2335_v36 = vmax.f32 %v2207_v4, 0.0  ;;  %2600 = vst [vmem:[#allocation1 + $0x20] ss:$4 sm:$0xff] %v2333_v16  ;;  %v4012_v31 = vsel %vm775_vm0, %v819_v59, %v820_v0  ;;  %v825_v8 = vrot.slane %v824_v3, 1  ;;  %v830_v19 = vsel %vm779_vm8, %v769_v30, %v770_v54 }
 0x103   : > { %v2336_v56 = vmax.f32 %v2208_v25, 0.0  ;;  %2601 = vst [vmem:[#allocation1 + $0x21] ss:$4 sm:$0xff] %v2334_v32  ;;  %v831_v44 = vsel %vm781_vm9, %v829_v37, %v830_v19  ;;  %v847_v49 = vperm.slane %v828_v9, 0  ;;  %v985_v52 = vrot.slane %v3962_v58, 4  ;;  %v1760_v37 = vpop.f32.mrf.mxu1 }
 0x104   : > { %v2330_v61 = vmax.f32 %v3938_v43, 0.0  ;;  %2602 = vst [vmem:[#allocation1 + $0x22] ss:$4 sm:$0xff] %v2335_v36  ;;  %v832_v34 = vrot.slane %v831_v44, 1  ;;  %v986_v4 = vrot.slane %v3962_v58, 6  ;;  %v1873_v59 = vrot.slane %v3988_v63, 2 }
 0x105   : > { %v794_v30 = vsel %vm777_vm7, %v3701_v5, %v753_v33  ;;  %v795_v54 = vsel %vm779_vm8, %v754_v21, %v755_v18  ;;  %v4029_v0 = vld.sshfl [vmem:[#allocation1] sm:$0xff pattern:$0x73625140]  ;;  %2603 = vst [vmem:[#allocation1 + $0x23] ss:$4 sm:$0xff] %v2336_v56  ;;  %v4031_v43 = vadd.f32 %v985_v52, %v847_v49  ;;  %v1874_v2 = vrot.slane %v3988_v63, 4 }
 0x106   : > { %2596 = vst [vmem:[#allocation1] ss:$4 sm:$0xff] %v2329_v24  ;;  %v845_v3 = vperm.slane %v4012_v31, 0  ;;  %v848_v23 = vperm.slane %v832_v34, 0  ;;  %v1875_v26 = vrot.slane %v3988_v63, 6  ;;  %v987_v16 = vrot.slane %v955_v47, 2 }
 0x107   : > { %2597 = vst [vmem:[#allocation1 + $0x1] ss:$4 sm:$0xff] %v2330_v61  ;;  %v4038_v46 = vperm.slane %v825_v8, 0  ;;  %v2071_v25 = vadd.f32 %v3988_v63, %v1406_v22  ;;  %v988_v32 = vrot.slane %v955_v47, 4  ;;  %v989_v9 = vrot.slane %v955_v47, 6 }
 0x108   : > { %2598 = vst [vmem:[#allocation1 + $0x2] ss:$4 sm:$0xff] %v2331_v6  ;;  %v4043_v36 = vadd.f32 %v986_v4, %v848_v23  ;;  %v2072_v62 = vadd.f32 %v1873_v59, %v3880_v57  ;;  %v4048_v24 = vadd.f32 %v955_v47, %v845_v3  ;;  %v2073_v8 = vadd.f32 %v1874_v2, %v1408_v50 }
 0x109   : > { %2599 = vst [vmem:[#allocation1 + $0x3] ss:$4 sm:$0xff] %v2332_v41  ;;  %v4053_v29 = vadd.f32 %v987_v16, %v4038_v46  ;;  %v4055_v22 = vadd.f32 %v988_v32, %v847_v49  ;;  %v796_v63 = vsel %vm781_vm9, %v794_v30, %v795_v54  ;;  %v2074_v6 = vadd.f32 %v1875_v26, %v3870_v10 }
 0x10a   : > { %v4059_v19 = vadd.f32 %v989_v9, %v848_v23  ;;  %v1876_v57 = vrot.slane %v1760_v37, 2  ;;  %v2209_v56 = vadd.f32 %v3745_v40, %v2071_v25  ;;  %v1877_v44 = vrot.slane %v1760_v37, 4 }
 0x10b   : > { %v1878_v52 = vrot.slane %v1760_v37, 6  ;;  %v2075_v13 = vadd.f32 %v1760_v37, %v1410_v38  ;;  %v2210_v50 = vadd.f32 %v3792_v45, %v2072_v62  ;;  %v797_v49 = vrot.slane %v796_v63, 1 }
 0x10c   : > { %v2076_v41 = vadd.f32 %v1876_v57, %v3970_v51  ;;  %v2211_v47 = vadd.f32 %v3759_v53, %v2073_v8  ;;  %v2077_v10 = vadd.f32 %v1877_v44, %v1412_v39  ;;  %v2212_v61 = vadd.f32 %v3789_v42, %v2074_v6  ;;  %v4079_v39 = vld.sshfl [vmem:[#allocation1 + $0x20] sm:$0xff pattern:$0x73625140] }
 0x10d   : > { %v2078_v34 = vadd.f32 %v1878_v52, %v3981_v35  ;;  %v2337_v4 = vmax.f32 %v2209_v56, 0.0  ;;  %v2213_v59 = vadd.f32 %v3745_v40, %v2075_v13  ;;  %v2338_v12 = vmax.f32 %v2210_v50, 0.0  ;;  %v1763_v13 = vpop.f32.mrf.mxu1 }
 0x10e   : > { %v2214_v38 = vadd.f32 %v3792_v45, %v2076_v41  ;;  %v972_v51 = vrot.slane %v3780_v20, 2  ;;  %v4076_v54 = vperm.slane %v797_v49, 0  ;;  %v2339_v2 = vmax.f32 %v2211_v47, 0.0 }
 0x10f   : > { %v2215_v14 = vadd.f32 %v3759_v53, %v2077_v10  ;;  %v2340_v23 = vmax.f32 %v2212_v61, 0.0  ;;  %v2216_v35 = vadd.f32 %v3789_v42, %v2078_v34  ;;  %v791_v26 = vsel %vm771_vm1, %v3701_v5, %v753_v33 }
 0x110   : > { %v4072_v30 = vld.sshfl [vmem:[#allocation1] sm:$0xff pattern:$0x73625140]  ;;  %v2341_v16 = vmax.f32 %v2213_v59, 0.0  ;;  %v756_v25 = vrot.slane %v3703_v7, 1  ;;  %v2342_v32 = vmax.f32 %v2214_v38, 0.0  ;;  %v792_v8 = vsel %vm773_vm10, %v754_v21, %v755_v18 }
 0x111   : > { %2606 = vst [vmem:[#allocation1] ss:$4 sm:$0xff] %v2337_v4  ;;  %v757_v9 = vrot.slane %v3703_v7, 2  ;;  %v758_v37 = vrot.slane %v3703_v7, 3  ;;  %v2343_v62 = vmax.f32 %v2215_v14, 0.0  ;;  %v2344_v63 = vmax.f32 %v2216_v35, 0.0 }
 0x112   : > { %2607 = vst [vmem:[#allocation1 + $0x1] ss:$4 sm:$0xff] %v2338_v12  ;;  %v4095_v33 = vsel %vm775_vm0, %v791_v26, %v792_v8  ;;  %v1023_v6 = vadd.f32 %v972_v51, %v4076_v54  ;;  %v801_v5 = vsel %vm777_vm7, %v3703_v7, %v756_v25  ;;  %v1880_v59 = vrot.slane %v1763_v13, 4 }
 0x113   : > { %2608 = vst [vmem:[#allocation1 + $0x2] ss:$4 sm:$0xff] %v2339_v2  ;;  %v837_v57 = vperm.slane %v4095_v33, 0  ;;  %v802_v21 = vsel %vm779_vm8, %v757_v9, %v758_v37  ;;  %v1881_v2 = vrot.slane %v1763_v13, 6 }
 0x114   : > { %2609 = vst [vmem:[#allocation1 + $0x3] ss:$4 sm:$0xff] %v2340_v23  ;;  %v1105_v56 = vrot.slane %v1023_v6, 1  ;;  %v1106_v44 = vrot.slane %v1023_v6, 2  ;;  %v1107_v52 = vrot.slane %v1023_v6, 3  ;;  %v803_v61 = vsel %vm781_vm9, %v801_v5, %v802_v21 }
 0x115   : > { %2610 = vst [vmem:[#allocation1 + $0x20] ss:$4 sm:$0xff] %v2341_v16  ;;  %v1022_v18 = vadd.f32 %v3780_v20, %v837_v57 }
 0x116   : > { %2611 = vst [vmem:[#allocation1 + $0x21] ss:$4 sm:$0xff] %v2342_v32  ;;  %v1237_v50 = vsel %vm771_vm1, %v1023_v6, %v1105_v56  ;;  %v1240_v10 = vsel %vm777_vm7, %v1023_v6, %v1105_v56  ;;  %v1238_v34 = vsel %vm773_vm10, %v1106_v44, %v1107_v52  ;;  %v1241_v4 = vsel %vm779_vm8, %v1106_v44, %v1107_v52 }
 0x117   : > { %2612 = vst [vmem:[#allocation1 + $0x22] ss:$4 sm:$0xff] %v2343_v62  ;;  %v1102_v41 = vrot.slane %v1022_v18, 1  ;;  %v1103_v49 = vrot.slane %v1022_v18, 2  ;;  %v1104_v47 = vrot.slane %v1022_v18, 3  ;;  %v4124_v35 = vsel %vm775_vm0, %v1237_v50, %v1238_v34 }
 0x118   : > { %2613 = vst [vmem:[#allocation1 + $0x23] ss:$4 sm:$0xff] %v2344_v63  ;;  %v1242_v26 = vsel %vm781_vm9, %v1240_v10, %v1241_v4  ;;  %v1416_v8 = vperm.slane %v4124_v35, 0  ;;  %v1879_v6 = vrot.slane %v1763_v13, 2  ;;  %v2768_v56 = vpack.c.bf16 %v3842_v55, %v3964_v17 }
 0x119   : > { %v1230_v12 = vsel %vm771_vm1, %v1022_v18, %v1102_v41  ;;  %v1231_v38 = vsel %vm773_vm10, %v1103_v49, %v1104_v47  ;;  %v1233_v51 = vsel %vm777_vm7, %v1022_v18, %v1102_v41  ;;  %v1234_v23 = vsel %vm779_vm8, %v1103_v49, %v1104_v47 }
 0x11a   : > { %v4120_v14 = vsel %vm775_vm0, %v1230_v12, %v1231_v38  ;;  %v1235_v16 = vsel %vm781_vm9, %v1233_v51, %v1234_v23  ;;  %v1243_v32 = vrot.slane %v1242_v26, 1  ;;  %v2081_v21 = vadd.f32 %v1880_v59, %v1416_v8  ;;  %3352 = vmatmul.msk.bf16.vlgmr.msra.gmra.mxu0 %vm2820_vm11, %v2768_v56 }
 0x11b   : > { %v1414_v62 = vperm.slane %v4120_v14, 0  ;;  %v1236_v63 = vrot.slane %v1235_v16, 1  ;;  %v804_v52 = vrot.slane %v803_v61, 1  ;;  %v4144_v17 = vld.sshfl [vmem:[#allocation1] sm:$0xff pattern:$0x73625140]  ;;  %v798_v38 = vsel %vm771_vm1, %v3703_v7, %v756_v25  ;;  %v1765_v16 = vpop.f32.mrf.mxu1 }
 0x11c   : > { %v4132_v44 = vperm.slane %v1243_v32, 0  ;;  %v2219_v55 = vadd.f32 %v3759_v53, %v2081_v21  ;;  %v974_v4 = vrot.slane %v3780_v20, 6  ;;  %v973_v51 = vrot.slane %v3780_v20, 4 }
 0x11d   : > { %v2079_v5 = vadd.f32 %v1763_v13, %v1414_v62  ;;  %v4138_v18 = vperm.slane %v1236_v63, 0  ;;  %v4150_v59 = vperm.slane %v804_v52, 0 }
 0x11e   : > { %v2082_v50 = vadd.f32 %v1881_v2, %v4132_v44  ;;  %v2347_v34 = vmax.f32 %v2219_v55, 0.0  ;;  %v799_v2 = vsel %vm773_vm10, %v757_v9, %v758_v37 }
 0x11f   : > { %v2217_v41 = vadd.f32 %v3745_v40, %v2079_v5  ;;  %v2080_v49 = vadd.f32 %v1879_v6, %v4138_v18  ;;  %v1025_v23 = vadd.f32 %v974_v4, %v4150_v59  ;;  %v4164_v26 = vsel %vm775_vm0, %v798_v38, %v799_v2 }
 0x120   : > { %v2220_v13 = vadd.f32 %v3789_v42, %v2082_v50  ;;  %2618 = vst [vmem:[#allocation1 + $0x2] ss:$4 sm:$0xff] %v2347_v34  ;;  %v839_v32 = vperm.slane %v4164_v26, 0  ;;  %v1884_v38 = vrot.slane %v1765_v16, 6 }
 0x121   : > { %v2345_v47 = vmax.f32 %v2217_v41, 0.0  ;;  %v2218_v10 = vadd.f32 %v3792_v45, %v2080_v49  ;;  %v1111_v63 = vrot.slane %v1025_v23, 1  ;;  %v1112_v25 = vrot.slane %v1025_v23, 2 }
 0x122   : > { %v2348_v61 = vmax.f32 %v2220_v13, 0.0  ;;  %v1113_v6 = vrot.slane %v1025_v23, 3  ;;  %v1024_v20 = vadd.f32 %v973_v51, %v839_v32  ;;  %v1883_v49 = vrot.slane %v1765_v16, 4 }
 0x123   : > { %2616 = vst [vmem:[#allocation1] ss:$4 sm:$0xff] %v2345_v47  ;;  %v2346_v12 = vmax.f32 %v2218_v10, 0.0  ;;  %v1251_v56 = vsel %vm771_vm1, %v1025_v23, %v1111_v63  ;;  %v1254_v7 = vsel %vm777_vm7, %v1025_v23, %v1111_v63  ;;  %v1882_v23 = vrot.slane %v1765_v16, 2 }
 0x124   : > { %2619 = vst [vmem:[#allocation1 + $0x3] ss:$4 sm:$0xff] %v2348_v61  ;;  %v1252_v9 = vsel %vm773_vm10, %v1112_v25, %v1113_v6  ;;  %v1255_v37 = vsel %vm779_vm8, %v1112_v25, %v1113_v6  ;;  %v1108_v5 = vrot.slane %v1024_v20, 1  ;;  %v1109_v21 = vrot.slane %v1024_v20, 2  ;;  %v1768_v6 = vpop.f32.mrf.mxu1 }
 0x125   : > { %2617 = vst [vmem:[#allocation1 + $0x1] ss:$4 sm:$0xff] %v2346_v12  ;;  %v1110_v52 = vrot.slane %v1024_v20, 3  ;;  %v4174_v50 = vsel %vm775_vm0, %v1251_v56, %v1252_v9  ;;  %v1256_v41 = vsel %vm781_vm9, %v1254_v7, %v1255_v37  ;;  %v4185_v37 = vld.sshfl [vmem:[#allocation1 + $0x20] sm:$0xff pattern:$0x73625140] }
 0x126   : > { %v1420_v55 = vperm.slane %v4174_v50, 0  ;;  %v1244_v13 = vsel %vm771_vm1, %v1024_v20, %v1108_v5  ;;  %v1247_v10 = vsel %vm777_vm7, %v1024_v20, %v1108_v5  ;;  %v1257_v12 = vrot.slane %v1256_v41, 1 }
 0x127   : > { %v1245_v47 = vsel %vm773_vm10, %v1109_v21, %v1110_v52  ;;  %v1248_v34 = vsel %vm779_vm8, %v1109_v21, %v1110_v52 }
 0x128   : > { %v1246_v4 = vsel %vm775_vm0, %v1244_v13, %v1245_v47  ;;  %v1249_v61 = vsel %vm781_vm9, %v1247_v10, %v1248_v34  ;;  %v2085_v63 = vadd.f32 %v1883_v49, %v1420_v55  ;;  %v1421_v25 = vperm.slane %v1257_v12, 0 }
 0x129   : > { %v1250_v51 = vrot.slane %v1249_v61, 1  ;;  %v1418_v2 = vperm.slane %v1246_v4, 0  ;;  %v1885_v49 = vrot.slane %v1768_v6, 2  ;;  %v1886_v10 = vrot.slane %v1768_v6, 4 }
 0x12a   : > { %v2223_v9 = vadd.f32 %v3759_v53, %v2085_v63  ;;  %v2086_v20 = vadd.f32 %v1884_v38, %v1421_v25  ;;  %v2087_v4 = vadd.f32 %v1768_v6, %v1414_v62  ;;  %v2769_v38 = vpack.c.bf16 %v3994_v1, %v4029_v0 }
 0x12b   : > { %v1419_v56 = vperm.slane %v1250_v51, 0  ;;  %v2083_v7 = vadd.f32 %v1765_v16, %v1418_v2  ;;  %v1887_v16 = vrot.slane %v1768_v6, 6  ;;  %v2088_v61 = vadd.f32 %v1885_v49, %v4138_v18 }
 0x12c   : > { %v2351_v52 = vmax.f32 %v2223_v9, 0.0  ;;  %v2224_v50 = vadd.f32 %v3789_v42, %v2086_v20  ;;  %v2089_v12 = vadd.f32 %v1886_v10, %v1416_v8  ;;  %3353 = vmatmul.msk.bf16.gmra.mxu0 %vm2820_vm11, %v2769_v38  ;;  %v1770_v62 = vpop.f32.mrf.mxu1 }
 0x12d   : > { %v2084_v5 = vadd.f32 %v1882_v23, %v1419_v56  ;;  %v2221_v21 = vadd.f32 %v3745_v40, %v2083_v7  ;;  %v2090_v51 = vadd.f32 %v1887_v16, %v4132_v44  ;;  %v2225_v23 = vadd.f32 %v3745_v40, %v2087_v4  ;;  %v4200_v7 = vld.sshfl [vmem:[#allocation1] sm:$0xff pattern:$0x73625140] }
 0x12e   : > { %2622 = vst [vmem:[#allocation1 + $0x22] ss:$4 sm:$0xff] %v2351_v52  ;;  %v2352_v47 = vmax.f32 %v2224_v50, 0.0  ;;  %v2226_v63 = vadd.f32 %v3792_v45, %v2088_v61  ;;  %v2227_v14 = vadd.f32 %v3759_v53, %v2089_v12  ;;  %v1888_v1 = vrot.slane %v1770_v62, 2 }
 0x12f   : > { %v2222_v41 = vadd.f32 %v3792_v45, %v2084_v5  ;;  %v2349_v13 = vmax.f32 %v2221_v21, 0.0  ;;  %v2228_v35 = vadd.f32 %v3789_v42, %v2090_v51  ;;  %v2353_v8 = vmax.f32 %v2225_v23, 0.0 }
 0x130   : > { %2623 = vst [vmem:[#allocation1 + $0x23] ss:$4 sm:$0xff] %v2352_v47  ;;  %v2354_v18 = vmax.f32 %v2226_v63, 0.0  ;;  %v2355_v6 = vmax.f32 %v2227_v14, 0.0  ;;  %v1889_v0 = vrot.slane %v1770_v62, 4  ;;  %v1890_v9 = vrot.slane %v1770_v62, 6 }
 0x131   : > { %v2350_v34 = vmax.f32 %v2222_v41, 0.0  ;;  %2620 = vst [vmem:[#allocation1 + $0x20] ss:$4 sm:$0xff] %v2349_v13  ;;  %v2356_v44 = vmax.f32 %v2228_v35, 0.0  ;;  %v2091_v20 = vadd.f32 %v1770_v62, %v1418_v2  ;;  %v2092_v5 = vadd.f32 %v1888_v1, %v1419_v56 }
 0x132   : > { %2626 = vst [vmem:[#allocation1] ss:$4 sm:$0xff] %v2353_v8  ;;  %v2093_v21 = vadd.f32 %v1889_v0, %v1420_v55  ;;  %v2094_v52 = vadd.f32 %v1890_v9, %v1421_v25  ;;  %v975_v47 = vrot.slane %v3800_v11, 2  ;;  %v1026_v55 = vadd.f32 %v3800_v11, %v837_v57 }
 0x133   : > { %2621 = vst [vmem:[#allocation1 + $0x21] ss:$4 sm:$0xff] %v2350_v34  ;;  %v2229_v50 = vadd.f32 %v3745_v40, %v2091_v20  ;;  %v2230_v41 = vadd.f32 %v3792_v45, %v2092_v5  ;;  %v2770_v25 = vpack.c.bf16 %v4079_v39, %v4072_v30 }
 0x134   : > { %2627 = vst [vmem:[#allocation1 + $0x1] ss:$4 sm:$0xff] %v2354_v18  ;;  %v2231_v13 = vadd.f32 %v3759_v53, %v2093_v21  ;;  %v2232_v49 = vadd.f32 %v3789_v42, %v2094_v52  ;;  %v1027_v40 = vadd.f32 %v975_v47, %v4076_v54  ;;  %v1114_v56 = vrot.slane %v1026_v55, 1  ;;  %v1773_v30 = vpop.f32.mrf.mxu1 }
 0x135   : > { %2628 = vst [vmem:[#allocation1 + $0x2] ss:$4 sm:$0xff] %v2355_v6  ;;  %v2357_v10 = vmax.f32 %v2229_v50, 0.0  ;;  %v2358_v34 = vmax.f32 %v2230_v41, 0.0  ;;  %v1115_v61 = vrot.slane %v1026_v55, 2  ;;  %v1116_v12 = vrot.slane %v1026_v55, 3 }
 0x136   : > { %2629 = vst [vmem:[#allocation1 + $0x3] ss:$4 sm:$0xff] %v2356_v44  ;;  %v2359_v16 = vmax.f32 %v2231_v13, 0.0  ;;  %v2360_v2 = vmax.f32 %v2232_v49, 0.0  ;;  %v1117_v38 = vrot.slane %v1027_v40, 1  ;;  %v1118_v51 = vrot.slane %v1027_v40, 2 }
 0x137   : > { %v1119_v23 = vrot.slane %v1027_v40, 3  ;;  %v1258_v33 = vsel %vm771_vm1, %v1026_v55, %v1114_v56  ;;  %v1259_v57 = vsel %vm773_vm10, %v1115_v61, %v1116_v12  ;;  %v1261_v63 = vsel %vm777_vm7, %v1026_v55, %v1114_v56 }
 0x138   : > { %v4223_v54 = vsel %vm775_vm0, %v1258_v33, %v1259_v57  ;;  %v1262_v14 = vsel %vm779_vm8, %v1115_v61, %v1116_v12  ;;  %v1265_v62 = vsel %vm771_vm1, %v1027_v40, %v1117_v38  ;;  %v1268_v18 = vsel %vm777_vm7, %v1027_v40, %v1117_v38 }
 0x139   : > { %v1263_v39 = vsel %vm781_vm9, %v1261_v63, %v1262_v14  ;;  %v1266_v8 = vsel %vm773_vm10, %v1118_v51, %v1119_v23  ;;  %v1269_v1 = vsel %vm779_vm8, %v1118_v51, %v1119_v23  ;;  %v1422_v0 = vperm.slane %v4223_v54, 0 }
 0x13a   : > { %v4210_v4 = vld.sshfl [vmem:[#allocation1 + $0x20] sm:$0xff pattern:$0x73625140]  ;;  %v1264_v35 = vrot.slane %v1263_v39, 1  ;;  %v4231_v6 = vsel %vm775_vm0, %v1265_v62, %v1266_v8  ;;  %v1891_v44 = vrot.slane %v1773_v30, 2  ;;  %v1270_v9 = vsel %vm781_vm9, %v1268_v18, %v1269_v1 }
 0x13b   : > { %2630 = vst [vmem:[#allocation1 + $0x20] ss:$4 sm:$0xff] %v2357_v10  ;;  %v1424_v5 = vperm.slane %v4231_v6, 0  ;;  %v1892_v21 = vrot.slane %v1773_v30, 4  ;;  %v1271_v52 = vrot.slane %v1270_v9, 1  ;;  %v1893_v50 = vrot.slane %v1773_v30, 6 }
 0x13c   : > { %2631 = vst [vmem:[#allocation1 + $0x21] ss:$4 sm:$0xff] %v2358_v34  ;;  %3354 = vmatmul.msk.bf16.gmra.mxu0 %vm2820_vm11, %v2770_v25  ;;  %v4236_v20 = vperm.slane %v1264_v35, 0  ;;  %v2095_v41 = vadd.f32 %v1773_v30, %v1422_v0  ;;  %v976_v47 = vrot.slane %v3800_v11, 4  ;;  %v4250_v34 = vld [vmem:[%s5005_s8] ss:$0 sm:$0xff]  ;;  %v1775_v14 = vpop.f32.mrf.mxu1 }
 0x13d   : > { %2632 = vst [vmem:[#allocation1 + $0x22] ss:$4 sm:$0xff] %v2359_v16  ;;  %v2097_v49 = vadd.f32 %v1892_v21, %v1424_v5  ;;  %v4245_v10 = vperm.slane %v1271_v52, 0  ;;  %v4256_v56 = vld.sshfl [vmem:[#allocation1] sm:$0xff pattern:$0x73625140]  ;;  %v735_v21 = vadd.f32 %v3804_v15, %v3823_v28 }
 0x13e   : > { %2633 = vst [vmem:[#allocation1 + $0x23] ss:$4 sm:$0xff] %v2360_v2  ;;  %v2096_v13 = vadd.f32 %v1891_v44, %v4236_v20  ;;  %v2233_v16 = vadd.f32 %v4250_v34, %v2095_v41  ;;  %v977_v38 = vrot.slane %v3800_v11, 6  ;;  %v1028_v23 = vadd.f32 %v976_v47, %v839_v32 }
 0x13f   : > { %v2235_v55 = vadd.f32 %v3759_v53, %v2097_v49  ;;  %v2098_v40 = vadd.f32 %v1893_v50, %v4245_v10 }
 0x140   : > { %v2234_v2 = vadd.f32 %v3792_v45, %v2096_v13  ;;  %v2361_v25 = vmax.f32 %v2233_v16, 0.0  ;;  %v1029_v57 = vadd.f32 %v977_v38, %v4150_v59  ;;  %v1120_v63 = vrot.slane %v1028_v23, 1 }
 0x141   : > { %v2363_v12 = vmax.f32 %v2235_v55, 0.0  ;;  %v2236_v51 = vadd.f32 %v3789_v42, %v2098_v40  ;;  %v1121_v30 = vrot.slane %v1028_v23, 2  ;;  %v1122_v39 = vrot.slane %v1028_v23, 3 }
 0x142   : > { %v2362_v61 = vmax.f32 %v2234_v2, 0.0  ;;  %2636 = vst [vmem:[#allocation1] ss:$4 sm:$0xff] %v2361_v25  ;;  %v1123_v62 = vrot.slane %v1029_v57, 1  ;;  %v1124_v35 = vrot.slane %v1029_v57, 2  ;;  %v1125_v8 = vrot.slane %v1029_v57, 3 }
 0x143   : > { %v2364_v33 = vmax.f32 %v2236_v51, 0.0  ;;  %2638 = vst [vmem:[#allocation1 + $0x2] ss:$4 sm:$0xff] %v2363_v12  ;;  %v1272_v11 = vsel %vm771_vm1, %v1028_v23, %v1120_v63  ;;  %v1273_v18 = vsel %vm773_vm10, %v1121_v30, %v1122_v39  ;;  %v1275_v26 = vsel %vm777_vm7, %v1028_v23, %v1120_v63 }
 0x144   : > { %2637 = vst [vmem:[#allocation1 + $0x1] ss:$4 sm:$0xff] %v2362_v61  ;;  %v4267_v32 = vsel %vm775_vm0, %v1272_v11, %v1273_v18  ;;  %v1276_v1 = vsel %vm779_vm8, %v1121_v30, %v1122_v39  ;;  %v1279_v59 = vsel %vm771_vm1, %v1029_v57, %v1123_v62  ;;  %v1280_v44 = vsel %vm773_vm10, %v1124_v35, %v1125_v8  ;;  %v1778_v12 = vpop.f32.mrf.mxu1 }
 0x145   : > { %2639 = vst [vmem:[#allocation1 + $0x3] ss:$4 sm:$0xff] %v2364_v33  ;;  %v1282_v9 = vsel %vm777_vm7, %v1029_v57, %v1123_v62  ;;  %v1277_v52 = vsel %vm781_vm9, %v1275_v26, %v1276_v1  ;;  %v4277_v50 = vsel %vm775_vm0, %v1279_v59, %v1280_v44  ;;  %v1283_v41 = vsel %vm779_vm8, %v1124_v35, %v1125_v8  ;;  %v4297_v11 = vld.sshfl [vmem:[#allocation1 + $0x20] sm:$0xff pattern:$0x73625140] }
 0x146   : > { %v1278_v13 = vrot.slane %v1277_v52, 1  ;;  %v1284_v49 = vsel %vm781_vm9, %v1282_v9, %v1283_v41  ;;  %v1426_v47 = vperm.slane %v4267_v32, 0  ;;  %v1428_v16 = vperm.slane %v4277_v50, 0 }
 0x147   : > { %v1285_v2 = vrot.slane %v1284_v49, 1  ;;  %v1894_v55 = vrot.slane %v1775_v14, 2  ;;  %v1895_v40 = vrot.slane %v1775_v14, 4  ;;  %v1896_v25 = vrot.slane %v1775_v14, 6 }
 0x148   : > { %v4283_v61 = vperm.slane %v1278_v13, 0  ;;  %v2099_v28 = vadd.f32 %v1775_v14, %v1426_v47  ;;  %v722_v23 = vrot.slane %v3804_v15, 2  ;;  %v759_v33 = vrot.slane %v735_v21, 1 }
 0x149   : > { %v4287_v38 = vperm.slane %v1285_v2, 0  ;;  %v2101_v51 = vadd.f32 %v1895_v40, %v1428_v16  ;;  %v760_v30 = vrot.slane %v735_v21, 2  ;;  %v761_v39 = vrot.slane %v735_v21, 3 }
 0x14a   : > { %v2100_v57 = vadd.f32 %v1894_v55, %v4283_v61  ;;  %v2237_v63 = vadd.f32 %v4250_v34, %v2099_v28  ;;  %v736_v15 = vadd.f32 %v722_v23, %v3821_v27  ;;  %v808_v1 = vsel %vm777_vm7, %v735_v21, %v759_v33 }
 0x14b   : > { %v2102_v62 = vadd.f32 %v1896_v25, %v4287_v38  ;;  %v2239_v35 = vadd.f32 %v3759_v53, %v2101_v51  ;;  %v1897_v44 = vrot.slane %v1778_v12, 2  ;;  %v809_v9 = vsel %vm779_vm8, %v760_v30, %v761_v39 }
 0x14c   : > { %v2238_v14 = vadd.f32 %v3792_v45, %v2100_v57  ;;  %v2365_v8 = vmax.f32 %v2237_v63, 0.0  ;;  %v1898_v41 = vrot.slane %v1778_v12, 4  ;;  %v1899_v13 = vrot.slane %v1778_v12, 6  ;;  %v4320_v57 = vld.sshfl [vmem:[#allocation1] sm:$0xff pattern:$0x73625140] }
 0x14d   : > { %v2240_v18 = vadd.f32 %v3789_v42, %v2102_v62  ;;  %v2367_v26 = vmax.f32 %v2239_v35, 0.0  ;;  %v2103_v49 = vadd.f32 %v1778_v12, %v1422_v0  ;;  %v2104_v2 = vadd.f32 %v1897_v44, %v4236_v20  ;;  %v1780_v20 = vpop.f32.mrf.mxu1 }
 0x14e   : > { %v2366_v59 = vmax.f32 %v2238_v14, 0.0  ;;  %2640 = vst [vmem:[#allocation1 + $0x20] ss:$4 sm:$0xff] %v2365_v8  ;;  %v2771_v27 = vpack.c.bf16 %v4185_v37, %v4144_v17  ;;  %v805_v55 = vsel %vm771_vm1, %v735_v21, %v759_v33  ;;  %v806_v40 = vsel %vm773_vm10, %v760_v30, %v761_v39 }
 0x14f   : > { %v2368_v52 = vmax.f32 %v2240_v18, 0.0  ;;  %2642 = vst [vmem:[#allocation1 + $0x22] ss:$4 sm:$0xff] %v2367_v26  ;;  %v2105_v25 = vadd.f32 %v1898_v41, %v1424_v5  ;;  %v2106_v28 = vadd.f32 %v1899_v13, %v4245_v10  ;;  %v810_v51 = vsel %vm781_vm9, %v808_v1, %v809_v9 }
 0x150   : > { %2641 = vst [vmem:[#allocation1 + $0x21] ss:$4 sm:$0xff] %v2366_v59  ;;  %v2241_v54 = vadd.f32 %v4250_v34, %v2103_v49  ;;  %v2242_v0 = vadd.f32 %v3792_v45, %v2104_v2  ;;  %3355 = vmatmul.msk.bf16.gmra.mxu0 %vm2820_vm11, %v2771_v27  ;;  %v762_v17 = vrot.slane %v736_v15, 1  ;;  %v763_v37 = vrot.slane %v736_v15, 2 }
 0x151   : > { %2643 = vst [vmem:[#allocation1 + $0x23] ss:$4 sm:$0xff] %v2368_v52  ;;  %v2243_v21 = vadd.f32 %v3759_v53, %v2105_v25  ;;  %v2244_v12 = vadd.f32 %v3789_v42, %v2106_v28  ;;  %v764_v23 = vrot.slane %v736_v15, 3  ;;  %v807_v6 = vsel %vm775_vm0, %v805_v55, %v806_v40 }
 0x152   : > { %v2369_v5 = vmax.f32 %v2241_v54, 0.0  ;;  %v2370_v10 = vmax.f32 %v2242_v0, 0.0  ;;  %v811_v33 = vrot.slane %v810_v51, 1  ;;  %v1900_v39 = vrot.slane %v1780_v20, 2 }
 0x153   : > { %v2371_v63 = vmax.f32 %v2243_v21, 0.0  ;;  %v2372_v30 = vmax.f32 %v2244_v12, 0.0  ;;  %v1901_v62 = vrot.slane %v1780_v20, 4  ;;  %v841_v35 = vperm.slane %v807_v6, 0 }
 0x154   : > { %2646 = vst [vmem:[#allocation1] ss:$4 sm:$0xff] %v2369_v5  ;;  %v1902_v14 = vrot.slane %v1780_v20, 6  ;;  %v2107_v8 = vadd.f32 %v1780_v20, %v1426_v47  ;;  %v815_v18 = vsel %vm777_vm7, %v736_v15, %v762_v17  ;;  %v816_v26 = vsel %vm779_vm8, %v763_v37, %v764_v23 }
 0x155   : > { %2647 = vst [vmem:[#allocation1 + $0x1] ss:$4 sm:$0xff] %v2370_v10  ;;  %v2108_v1 = vadd.f32 %v1900_v39, %v4283_v61  ;;  %v2109_v59 = vadd.f32 %v1901_v62, %v1428_v16  ;;  %v842_v44 = vperm.slane %v811_v33, 0  ;;  %v981_v9 = vrot.slane %v3897_v48, 2  ;;  %v4344_v25 = vpop.f32.mrf.mxu1 }
 0x156   : > { %2648 = vst [vmem:[#allocation1 + $0x2] ss:$4 sm:$0xff] %v2371_v63  ;;  %v2110_v52 = vadd.f32 %v1902_v14, %v4287_v38  ;;  %v2245_v41 = vadd.f32 %v4250_v34, %v2107_v8  ;;  %v812_v32 = vsel %vm771_vm1, %v736_v15, %v762_v17  ;;  %v813_v47 = vsel %vm773_vm10, %v763_v37, %v764_v23  ;;  %v4340_v38 = vpop.f32.mrf.mxu3 }
 0x157   : > { %2649 = vst [vmem:[#allocation1 + $0x3] ss:$4 sm:$0xff] %v2372_v30  ;;  %v2246_v13 = vadd.f32 %v3792_v45, %v2108_v1  ;;  %v2247_v49 = vadd.f32 %v3759_v53, %v2109_v59  ;;  %v817_v61 = vsel %vm781_vm9, %v815_v18, %v816_v26  ;;  %v1034_v50 = vadd.f32 %v3897_v48, %v841_v35 }
 0x158   : > { %v2248_v16 = vadd.f32 %v3789_v42, %v2110_v52  ;;  %v2373_v2 = vmax.f32 %v2245_v41, 0.0  ;;  %v978_v27 = vrot.slane %v3847_v60, 2  ;;  %v4342_v55 = vld.sshfl [vmem:[#allocation1 + $0x20] sm:$0xff pattern:$0x73625140]  ;;  %v4347_v28 = vsel %vm775_vm0, %v812_v32, %v813_v47 }
 0x159   : > { %v2374_v15 = vmax.f32 %v2246_v13, 0.0  ;;  %v2375_v40 = vmax.f32 %v2247_v49, 0.0  ;;  %v1035_v51 = vadd.f32 %v981_v9, %v842_v44  ;;  %v818_v0 = vrot.slane %v817_v61, 1 }
 0x15a   : > { %v2376_v54 = vmax.f32 %v2248_v16, 0.0  ;;  %2650 = vst [vmem:[#allocation1 + $0x20] ss:$4 sm:$0xff] %v2373_v2  ;;  %v1030_v20 = vadd.f32 %v3847_v60, %v841_v35  ;;  %v1138_v17 = vrot.slane %v1034_v50, 1  ;;  %v1139_v37 = vrot.slane %v1034_v50, 2 }
 0x15b   : > { %2651 = vst [vmem:[#allocation1 + $0x21] ss:$4 sm:$0xff] %v2374_v15  ;;  %v1140_v21 = vrot.slane %v1034_v50, 3  ;;  %v843_v12 = vperm.slane %v4347_v28, 0  ;;  %v1031_v23 = vadd.f32 %v978_v27, %v842_v44  ;;  %v982_v6 = vrot.slane %v3897_v48, 4 }
 0x15c   : > { %2652 = vst [vmem:[#allocation1 + $0x22] ss:$4 sm:$0xff] %v2375_v40  ;;  %v2772_v5 = vpack.c.bf16 %v4210_v4, %v4200_v7  ;;  %v979_v10 = vrot.slane %v3847_v60, 4  ;;  %v1141_v33 = vrot.slane %v1035_v51, 1  ;;  %v1142_v63 = vrot.slane %v1035_v51, 2 }
 0x15d   : > { %2653 = vst [vmem:[#allocation1 + $0x23] ss:$4 sm:$0xff] %v2376_v54  ;;  %v1143_v30 = vrot.slane %v1035_v51, 3  ;;  %v4355_v39 = vperm.slane %v818_v0, 0  ;;  %v980_v62 = vrot.slane %v3847_v60, 6  ;;  %v983_v35 = vrot.slane %v3897_v48, 6 }
 0x15e   : > { %v1126_v14 = vrot.slane %v1030_v20, 1  ;;  %v1317_v8 = vsel %vm777_vm7, %v1034_v50, %v1138_v17  ;;  %v1318_v18 = vsel %vm779_vm8, %v1139_v37, %v1140_v21  ;;  %v1127_v26 = vrot.slane %v1030_v20, 2  ;;  %v4372_v13 = vpop.f32.mrf.mxu3 }
 0x15f   : > { %v1128_v7 = vrot.slane %v1030_v20, 3  ;;  %v4364_v4 = vadd.f32 %v982_v6, %v843_v12  ;;  %v1314_v1 = vsel %vm771_vm1, %v1034_v50, %v1138_v17  ;;  %v1129_v59 = vrot.slane %v1031_v23, 1  ;;  %v4376_v50 = vpop.f32.mrf.mxu1 }
 0x160   : > { %3356 = vmatmul.msk.bf16.gmra.mxu0 %vm2820_vm11, %v2772_v5  ;;  %v1130_v44 = vrot.slane %v1031_v23, 2  ;;  %v1324_v9 = vsel %vm777_vm7, %v1035_v51, %v1141_v33  ;;  %v1325_v48 = vsel %vm779_vm8, %v1142_v63, %v1143_v30  ;;  %v1131_v52 = vrot.slane %v1031_v23, 3 }
 0x161   : > { %v1286_v41 = vsel %vm771_vm1, %v1030_v20, %v1126_v14  ;;  %v1315_v32 = vsel %vm773_vm10, %v1139_v37, %v1140_v21  ;;  %v1319_v47 = vsel %vm781_vm9, %v1317_v8, %v1318_v18  ;;  %v1287_v49 = vsel %vm773_vm10, %v1127_v26, %v1128_v7 }
 0x162   : > { %v1289_v61 = vsel %vm777_vm7, %v1030_v20, %v1126_v14  ;;  %v1321_v16 = vsel %vm771_vm1, %v1035_v51, %v1141_v33  ;;  %v1322_v2 = vsel %vm773_vm10, %v1142_v63, %v1143_v30  ;;  %v4381_v27 = vsel %vm775_vm0, %v1286_v41, %v1287_v49 }
 0x163   : > { %v1290_v15 = vsel %vm779_vm8, %v1127_v26, %v1128_v7  ;;  %v1326_v40 = vsel %vm781_vm9, %v1324_v9, %v1325_v48  ;;  %v1293_v0 = vsel %vm771_vm1, %v1031_v23, %v1129_v59  ;;  %v1294_v17 = vsel %vm773_vm10, %v1130_v44, %v1131_v52 }
 0x164   : > { %v1291_v54 = vsel %vm781_vm9, %v1289_v61, %v1290_v15  ;;  %v1295_v37 = vsel %vm775_vm0, %v1293_v0, %v1294_v17  ;;  %v1296_v51 = vsel %vm777_vm7, %v1031_v23, %v1129_v59  ;;  %v1297_v21 = vsel %vm779_vm8, %v1130_v44, %v1131_v52  ;;  %v2655_v15 = vld.sshfl [vmem:[#allocation1 + $0x20] sm:$0xff pattern:$0x73625140] }
 0x165   : > { %v1292_v20 = vrot.slane %v1291_v54, 1  ;;  %v1298_v6 = vsel %vm781_vm9, %v1296_v51, %v1297_v21  ;;  %v1430_v5 = vperm.slane %v4381_v27, 0  ;;  %v1432_v33 = vperm.slane %v1295_v37, 0 }
 0x166   : > { %v1903_v63 = vrot.slane %v4344_v25, 2  ;;  %v1299_v30 = vrot.slane %v1298_v6, 1  ;;  %v1904_v8 = vrot.slane %v4344_v25, 4  ;;  %v1905_v18 = vrot.slane %v4344_v25, 6 }
 0x167   : > { %v1431_v14 = vperm.slane %v1292_v20, 0  ;;  %v4397_v26 = vadd.f32 %v983_v35, %v4355_v39  ;;  %v984_v23 = vrot.slane %v3962_v58, 2  ;;  %v1320_v7 = vrot.slane %v1319_v47, 1  ;;  %v1788_v0 = vpop.f32.mrf.mxu1  ;;  %v2654_v20 = vld.sshfl [vmem:[#allocation1] sm:$0xff pattern:$0x73625140] }
 0x168   : > { %v2111_v59 = vadd.f32 %v4344_v25, %v1430_v5  ;;  %v4402_v44 = vsel %vm775_vm0, %v1314_v1, %v1315_v32  ;;  %v1433_v9 = vperm.slane %v1299_v30, 0  ;;  %v2113_v52 = vadd.f32 %v1904_v8, %v1432_v33 }
 0x169   : > { %v2112_v48 = vadd.f32 %v1903_v63, %v1431_v14  ;;  %v4405_v41 = vsel %vm775_vm0, %v1321_v16, %v1322_v2  ;;  %v1327_v49 = vrot.slane %v1326_v40, 1  ;;  %v1915_v61 = vrot.slane %v4340_v38, 2  ;;  %v4416_v2 = vpop.f32.mrf.mxu3 }
 0x16a   : > { %v2249_v35 = vadd.f32 %v4250_v34, %v2111_v59  ;;  %v1916_v27 = vrot.slane %v4340_v38, 4  ;;  %v2114_v47 = vadd.f32 %v1905_v18, %v1433_v9  ;;  %v2251_v1 = vadd.f32 %v3759_v53, %v2113_v52 }
 0x16b   : > { %v2250_v25 = vadd.f32 %v3792_v45, %v2112_v48  ;;  %v1438_v32 = vperm.slane %v4402_v44, 0  ;;  %v4413_v54 = vperm.slane %v1320_v7, 0  ;;  %v1917_v16 = vrot.slane %v4340_v38, 6 }
 0x16c   : > { %v2377_v40 = vmax.f32 %v2249_v35, 0.0  ;;  %v1440_v17 = vperm.slane %v4405_v41, 0  ;;  %v2252_v37 = vadd.f32 %v3789_v42, %v2114_v47  ;;  %v2379_v21 = vmax.f32 %v2251_v1, 0.0 }
 0x16d   : > { %v2378_v51 = vmax.f32 %v2250_v25, 0.0  ;;  %v4420_v6 = vperm.slane %v1327_v49, 0  ;;  %v2127_v63 = vadd.f32 %v4340_v38, %v1438_v32  ;;  %v2128_v30 = vadd.f32 %v1915_v61, %v4413_v54 }
 0x16e   : > { %2656 = vst [vmem:[#allocation1] ss:$4 sm:$0xff] %v2377_v40  ;;  %v2775_v8 = vpack.c.bf16 %v2655_v15, %v2654_v20  ;;  %v2129_v18 = vadd.f32 %v1916_v27, %v1440_v17  ;;  %v2380_v7 = vmax.f32 %v2252_v37, 0.0  ;;  %v1909_v59 = vrot.slane %v1788_v0, 2 }
 0x16f   : > { %2657 = vst [vmem:[#allocation1 + $0x1] ss:$4 sm:$0xff] %v2378_v51  ;;  %v1910_v48 = vrot.slane %v1788_v0, 4  ;;  %v2130_v52 = vadd.f32 %v1917_v16, %v4420_v6  ;;  %v1144_v49 = vrot.slane %v4364_v4, 1  ;;  %v1145_v35 = vrot.slane %v4364_v4, 2 }
 0x170   : > { %2658 = vst [vmem:[#allocation1 + $0x2] ss:$4 sm:$0xff] %v2379_v21  ;;  %3359 = vmatmul.msk.bf16.vlgmr.msrb.gmra.mxu2 %vm2820_vm11, %v2775_v8  ;;  %v1911_v38 = vrot.slane %v1788_v0, 6  ;;  %v1146_v61 = vrot.slane %v4364_v4, 3  ;;  %v2119_v15 = vadd.f32 %v1788_v0, %v1430_v5  ;;  %v2120_v47 = vadd.f32 %v1909_v59, %v1431_v14 }
 0x171   : > { %2659 = vst [vmem:[#allocation1 + $0x3] ss:$4 sm:$0xff] %v2380_v7  ;;  %v2121_v27 = vadd.f32 %v1910_v48, %v1432_v33  ;;  %v1147_v25 = vrot.slane %v4397_v26, 1  ;;  %v1148_v1 = vrot.slane %v4397_v26, 2  ;;  %v2773_v16 = vpack.c.bf16 %v4297_v11, %v4256_v56  ;;  %v4466_v8 = vpop.f32.mrf.mxu3 }
 0x172   : > { %v2122_v40 = vadd.f32 %v1911_v38, %v1433_v9  ;;  %v1149_v20 = vrot.slane %v4397_v26, 3  ;;  %v2257_v37 = vadd.f32 %v4250_v34, %v2119_v15  ;;  %v2258_v51 = vadd.f32 %v3792_v45, %v2120_v47 }
 0x173   : > { %v2259_v21 = vadd.f32 %v3759_v53, %v2121_v27  ;;  %v4444_v5 = vadd.f32 %v3962_v58, %v845_v3  ;;  %v4447_v33 = vadd.f32 %v4250_v34, %v2127_v63  ;;  %v4450_v14 = vadd.f32 %v3792_v45, %v2128_v30  ;;  %3357 = vmatmul.msk.bf16.gmra.mxu0 %vm2820_vm11, %v2773_v16 }
 0x174   : > { %v2260_v56 = vadd.f32 %v3789_v42, %v2122_v40  ;;  %v4455_v11 = vadd.f32 %v3759_v53, %v2129_v18  ;;  %v4458_v9 = vadd.f32 %v3789_v42, %v2130_v52  ;;  %v1328_v31 = vsel %vm771_vm1, %v4364_v4, %v1144_v49 }
 0x175   : > { %v2385_v3 = vmax.f32 %v2257_v37, 0.0  ;;  %v1329_v0 = vsel %vm773_vm10, %v1145_v35, %v1146_v61  ;;  %v1331_v63 = vsel %vm777_vm7, %v4364_v4, %v1144_v49  ;;  %v1332_v30 = vsel %vm779_vm8, %v1145_v35, %v1146_v61 }
 0x176   : > { %v2386_v7 = vmax.f32 %v2258_v51, 0.0  ;;  %v1335_v18 = vsel %vm771_vm1, %v4397_v26, %v1147_v25  ;;  %v1336_v59 = vsel %vm773_vm10, %v1148_v1, %v1149_v20  ;;  %v1921_v48 = vrot.slane %v4416_v2, 2 }
 0x177   : > { %v2387_v52 = vmax.f32 %v2259_v21, 0.0  ;;  %v1338_v38 = vsel %vm777_vm7, %v4397_v26, %v1147_v25  ;;  %v1339_v15 = vsel %vm779_vm8, %v1148_v1, %v1149_v20  ;;  %v1922_v4 = vrot.slane %v4416_v2, 4 }
 0x178   : > { %v4476_v49 = vld.sshfl [vmem:[#allocation1] sm:$0xff pattern:$0x73625140]  ;;  %v2388_v35 = vmax.f32 %v2260_v56, 0.0  ;;  %v1032_v61 = vadd.f32 %v979_v10, %v843_v12  ;;  %v1033_v47 = vadd.f32 %v980_v62, %v4355_v39  ;;  %v4488_v26 = vadd.f32 %v984_v23, %v4038_v46 }
 0x179   : > { %v2393_v27 = vmax.f32 %v4447_v33, 0.0  ;;  %2666 = vst [vmem:[#allocation1] ss:$4 sm:$0xff] %v2385_v3  ;;  %v2394_v25 = vmax.f32 %v4450_v14, 0.0  ;;  %v4493_v1 = vsel %vm775_vm0, %v1328_v31, %v1329_v0  ;;  %v4496_v28 = vsel %vm781_vm9, %v1331_v63, %v1332_v30 }
 0x17a   : > { %v1923_v12 = vrot.slane %v4416_v2, 6  ;;  %2667 = vst [vmem:[#allocation1 + $0x1] ss:$4 sm:$0xff] %v2386_v7  ;;  %v4500_v60 = vsel %vm775_vm0, %v1335_v18, %v1336_v59  ;;  %v4503_v58 = vsel %vm781_vm9, %v1338_v38, %v1339_v15  ;;  %v2135_v46 = vadd.f32 %v4416_v2, %v1438_v32 }
 0x17b   : > { %v2136_v10 = vadd.f32 %v1921_v48, %v4413_v54  ;;  %2668 = vst [vmem:[#allocation1 + $0x2] ss:$4 sm:$0xff] %v2387_v52  ;;  %v2395_v39 = vmax.f32 %v4455_v11, 0.0  ;;  %v2396_v62 = vmax.f32 %v4458_v9, 0.0  ;;  %v2137_v23 = vadd.f32 %v1922_v4, %v1440_v17 }
 0x17c   : > { %v1150_v40 = vrot.slane %v4444_v5, 1  ;;  %2669 = vst [vmem:[#allocation1 + $0x3] ss:$4 sm:$0xff] %v2388_v35  ;;  %v1334_v16 = vrot.slane %v4496_v28, 1  ;;  %v1442_v20 = vperm.slane %v4493_v1, 0  ;;  %v1151_v44 = vrot.slane %v4444_v5, 2 }
 0x17d   : > { %v1152_v32 = vrot.slane %v4444_v5, 3  ;;  %v1341_v54 = vrot.slane %v4503_v58, 1  ;;  %v1918_v37 = vrot.slane %v4372_v13, 2  ;;  %v4522_v41 = vadd.f32 %v1923_v12, %v4420_v6  ;;  %v4537_v6 = vpop.f32.mrf.mxu3 }
 0x17e   : > { %v4525_v17 = vadd.f32 %v4250_v34, %v2135_v46  ;;  %v4528_v51 = vadd.f32 %v3792_v45, %v2136_v10  ;;  %v1132_v21 = vrot.slane %v1032_v61, 1  ;;  %v1133_v33 = vrot.slane %v1032_v61, 2 }
 0x17f   : > { %v4531_v14 = vadd.f32 %v3759_v53, %v2137_v23  ;;  %v1153_v56 = vrot.slane %v4488_v26, 1  ;;  %v1154_v11 = vrot.slane %v4488_v26, 2  ;;  %v1342_v9 = vsel %vm771_vm1, %v4444_v5, %v1150_v40 }
 0x180   : > { %v1343_v31 = vsel %vm773_vm10, %v1151_v44, %v1152_v32  ;;  %v1345_v3 = vsel %vm777_vm7, %v4444_v5, %v1150_v40  ;;  %v1134_v0 = vrot.slane %v1032_v61, 3  ;;  %v1135_v63 = vrot.slane %v1033_v47, 1 }
 0x181   : > { %v1906_v30 = vrot.slane %v4376_v50, 2  ;;  %v1907_v7 = vrot.slane %v4376_v50, 4  ;;  %v1136_v18 = vrot.slane %v1033_v47, 2  ;;  %v1137_v59 = vrot.slane %v1033_v47, 3 }
 0x182   : > { %v1300_v52 = vsel %vm771_vm1, %v1032_v61, %v1132_v21  ;;  %v1301_v38 = vsel %vm773_vm10, %v1133_v33, %v1134_v0  ;;  %v1303_v15 = vsel %vm777_vm7, %v1032_v61, %v1132_v21  ;;  %v1304_v4 = vsel %vm779_vm8, %v1133_v33, %v1134_v0 }
 0x183   : > { %v4544_v48 = vld.sshfl [vmem:[#allocation1] sm:$0xff pattern:$0x73625140]  ;;  %v1302_v5 = vsel %vm775_vm0, %v1300_v52, %v1301_v38  ;;  %v1305_v35 = vsel %vm781_vm9, %v1303_v15, %v1304_v4  ;;  %v1307_v12 = vsel %vm771_vm1, %v1033_v47, %v1135_v63  ;;  %v1308_v46 = vsel %vm773_vm10, %v1136_v18, %v1137_v59  ;;  %v1790_v15 = vpop.f32.mrf.mxu1 }
 0x184   : > { %2676 = vst [vmem:[#allocation1] ss:$4 sm:$0xff] %v2393_v27  ;;  %v1306_v10 = vrot.slane %v1305_v35, 1  ;;  %v1309_v23 = vsel %vm775_vm0, %v1307_v12, %v1308_v46  ;;  %v1310_v40 = vsel %vm777_vm7, %v1033_v47, %v1135_v63  ;;  %v1311_v2 = vsel %vm779_vm8, %v1136_v18, %v1137_v59 }
 0x185   : > { %2677 = vst [vmem:[#allocation1 + $0x1] ss:$4 sm:$0xff] %v2394_v25  ;;  %v1346_v61 = vsel %vm779_vm8, %v1151_v44, %v1152_v32  ;;  %v1312_v27 = vsel %vm781_vm9, %v1310_v40, %v1311_v2  ;;  %v1434_v21 = vperm.slane %v1302_v5, 0  ;;  %v1436_v33 = vperm.slane %v1309_v23, 0  ;;  %v4571_v59 = vpop.f32.mrf.mxu3 }
 0x186   : > { %2678 = vst [vmem:[#allocation1 + $0x2] ss:$4 sm:$0xff] %v2395_v39  ;;  %v1155_v0 = vrot.slane %v4488_v26, 3  ;;  %v1908_v52 = vrot.slane %v4376_v50, 6  ;;  %v1313_v25 = vrot.slane %v1312_v27, 1  ;;  %v1435_v38 = vperm.slane %v1306_v10, 0 }
 0x187   : > { %2679 = vst [vmem:[#allocation1 + $0x3] ss:$4 sm:$0xff] %v2396_v62  ;;  %v2401_v4 = vmax.f32 %v4525_v17, 0.0  ;;  %v2115_v47 = vadd.f32 %v4376_v50, %v1434_v21  ;;  %v2117_v63 = vadd.f32 %v1907_v7, %v1436_v33  ;;  %v2774_v39 = vpack.c.bf16 %v4342_v55, %v4320_v57 }
 0x188   : > { %v4566_v44 = vsel %vm775_vm0, %v1342_v9, %v1343_v31  ;;  %v1347_v32 = vsel %vm781_vm9, %v1345_v3, %v1346_v61  ;;  %v1437_v2 = vperm.slane %v1313_v25, 0  ;;  %v2116_v18 = vadd.f32 %v1906_v30, %v1435_v38 }
 0x189   : > { %v1352_v62 = vsel %vm777_vm7, %v4488_v26, %v1153_v56  ;;  %v1912_v5 = vrot.slane %v1790_v15, 2  ;;  %v2253_v17 = vadd.f32 %v4250_v34, %v2115_v47  ;;  %v2255_v50 = vadd.f32 %v3759_v53, %v2117_v63  ;;  %3358 = vmatmul.msk.bf16.gmra.mxu0 %vm2820_vm11, %v2774_v39 }
 0x18a   : > { %v1353_v57 = vsel %vm779_vm8, %v1154_v11, %v1155_v0  ;;  %v1913_v55 = vrot.slane %v1790_v15, 4  ;;  %v2118_v9 = vadd.f32 %v1908_v52, %v1437_v2  ;;  %v2254_v31 = vadd.f32 %v3792_v45, %v2116_v18 }
 0x18b   : > { %v1348_v3 = vrot.slane %v1347_v32, 1  ;;  %v1914_v30 = vrot.slane %v1790_v15, 6  ;;  %v2381_v7 = vmax.f32 %v2253_v17, 0.0  ;;  %v2383_v35 = vmax.f32 %v2255_v50, 0.0 }
 0x18c   : > { %v1349_v12 = vsel %vm771_vm1, %v4488_v26, %v1153_v56  ;;  %v2123_v46 = vadd.f32 %v1790_v15, %v1434_v21  ;;  %v2256_v10 = vadd.f32 %v3789_v42, %v2118_v9  ;;  %v2382_v23 = vmax.f32 %v2254_v31, 0.0 }
 0x18d   : > { %v1350_v40 = vsel %vm773_vm10, %v1154_v11, %v1155_v0  ;;  %v1354_v61 = vsel %vm781_vm9, %v1352_v62, %v1353_v57  ;;  %v1927_v27 = vrot.slane %v4537_v6, 2  ;;  %v2124_v52 = vadd.f32 %v1912_v5, %v1435_v38  ;;  %2660 = vst [vmem:[#allocation1 + $0x20] ss:$4 sm:$0xff] %v2381_v7  ;;  %v4618_v9 = vpop.f32.mrf.mxu3 }
 0x18e   : > { %v2131_v25 = vadd.f32 %v4372_v13, %v1442_v20  ;;  %v2276_v56 = vadd.f32 %v3789_v42, %v4522_v41  ;;  %v2125_v21 = vadd.f32 %v1913_v55, %v1436_v33  ;;  %v2384_v15 = vmax.f32 %v2256_v10, 0.0  ;;  %2661 = vst [vmem:[#allocation1 + $0x21] ss:$4 sm:$0xff] %v2382_v23  ;;  %v4593_v47 = vld.sshfl [vmem:[#allocation1] sm:$0xff pattern:$0x73625140] }
 0x18f   : > { %v2402_v26 = vmax.f32 %v4528_v51, 0.0  ;;  %v1446_v11 = vperm.slane %v4566_v44, 0  ;;  %v4597_v0 = vperm.slane %v1348_v3, 0  ;;  %v2126_v38 = vadd.f32 %v1914_v30, %v1437_v2  ;;  %2662 = vst [vmem:[#allocation1 + $0x22] ss:$4 sm:$0xff] %v2383_v35 }
 0x190   : > { %v2403_v63 = vmax.f32 %v4531_v14, 0.0  ;;  %v4601_v39 = vsel %vm775_vm0, %v1349_v12, %v1350_v40  ;;  %v1355_v32 = vrot.slane %v1354_v61, 1  ;;  %v2261_v41 = vadd.f32 %v4250_v34, %v2123_v46  ;;  %2663 = vst [vmem:[#allocation1 + $0x23] ss:$4 sm:$0xff] %v2384_v15 }
 0x191   : > { %v1928_v33 = vrot.slane %v4537_v6, 4  ;;  %v2143_v51 = vadd.f32 %v4537_v6, %v1446_v11  ;;  %v2144_v18 = vadd.f32 %v1927_v27, %v4597_v0  ;;  %v2262_v2 = vadd.f32 %v3792_v45, %v2124_v52  ;;  %2686 = vst [vmem:[#allocation1] ss:$4 sm:$0xff] %v2401_v4 }
 0x192   : > { %v1919_v14 = vrot.slane %v4372_v13, 4  ;;  %v2404_v62 = vmax.f32 %v2276_v56, 0.0  ;;  %v1929_v5 = vrot.slane %v4537_v6, 6  ;;  %v2263_v17 = vadd.f32 %v3759_v53, %v2125_v21  ;;  %2687 = vst [vmem:[#allocation1 + $0x1] ss:$4 sm:$0xff] %v2402_v26 }
 0x193   : > { %v1920_v50 = vrot.slane %v4372_v13, 6  ;;  %v4615_v57 = vadd.f32 %v4250_v34, %v2131_v25  ;;  %v1448_v55 = vperm.slane %v4601_v39, 0  ;;  %v2264_v31 = vadd.f32 %v3789_v42, %v2126_v38  ;;  %2688 = vst [vmem:[#allocation1 + $0x2] ss:$4 sm:$0xff] %v2403_v63 }
 0x194   : > { %v1443_v4 = vperm.slane %v1334_v16, 0  ;;  %v1445_v6 = vperm.slane %v1341_v54, 0  ;;  %v4625_v3 = vperm.slane %v1355_v32, 0  ;;  %v2389_v30 = vmax.f32 %v2261_v41, 0.0  ;;  %2689 = vst [vmem:[#allocation1 + $0x3] ss:$4 sm:$0xff] %v2404_v62 }
 0x195   : > { %v2145_v7 = vadd.f32 %v1928_v33, %v1448_v55  ;;  %v2281_v35 = vadd.f32 %v4250_v34, %v2143_v51  ;;  %v2282_v12 = vadd.f32 %v3792_v45, %v2144_v18  ;;  %v2390_v46 = vmax.f32 %v2262_v2, 0.0 }
 0x196   : > { %v2132_v28 = vadd.f32 %v1918_v37, %v1443_v4  ;;  %v5009_v16 = vperm.slane %v4500_v60, 0  ;;  %v2146_v54 = vadd.f32 %v1929_v5, %v4625_v3  ;;  %v2391_v10 = vmax.f32 %v2263_v17, 0.0 }
 0x197   : > { %v2134_v23 = vadd.f32 %v1920_v50, %v1445_v6  ;;  %v2397_v40 = vmax.f32 %v4615_v57, 0.0  ;;  %v1924_v61 = vrot.slane %v4466_v8, 2  ;;  %v2392_v27 = vmax.f32 %v2264_v31, 0.0  ;;  %v2665_v52 = vld.sshfl [vmem:[#allocation1 + $0x20] sm:$0xff pattern:$0x73625140] }
 0x198   : > { %v2133_v58 = vadd.f32 %v1919_v14, %v5009_v16  ;;  %v1925_v25 = vrot.slane %v4466_v8, 4  ;;  %v1926_v56 = vrot.slane %v4466_v8, 6  ;;  %v2139_v13 = vadd.f32 %v4466_v8, %v1442_v20  ;;  %2670 = vst [vmem:[#allocation1 + $0x20] ss:$4 sm:$0xff] %v2389_v30  ;;  %v2878_v20 = vpop.f32.mrf.mxu0 }
 0x199   : > { %v2776_v37 = vpack.c.bf16 %v2665_v52, %v4476_v49  ;;  %v2283_v21 = vadd.f32 %v3759_v53, %v2145_v7  ;;  %v2409_v15 = vmax.f32 %v2281_v35, 0.0  ;;  %v2410_v26 = vmax.f32 %v2282_v12, 0.0  ;;  %2671 = vst [vmem:[#allocation1 + $0x21] ss:$4 sm:$0xff] %v2390_v46  ;;  %v4657_v49 = vld [vmem:[%s5007_s10] ss:$0 sm:$0xff]  ;;  %v4677_v7 = vpop.f32.mrf.mxu3 }
 0x19a   : > { %v1156_v38 = vrot.slane %v4031_v43, 1  ;;  %v4648_v63 = vadd.f32 %v3759_v53, %v2133_v58  ;;  %v2284_v32 = vadd.f32 %v3789_v42, %v2146_v54  ;;  %v1157_v1 = vrot.slane %v4031_v43, 2  ;;  %2672 = vst [vmem:[#allocation1 + $0x22] ss:$4 sm:$0xff] %v2391_v10 }
 0x19b   : > { %v1158_v8 = vrot.slane %v4031_v43, 3  ;;  %3360 = vmatmul.msk.bf16.gmra.mxu2 %vm2820_vm11, %v2776_v37  ;;  %v2270_v41 = vadd.f32 %v3792_v45, %v2132_v28  ;;  %v2272_v33 = vadd.f32 %v3789_v42, %v2134_v23  ;;  %v2140_v51 = vadd.f32 %v1924_v61, %v1443_v4  ;;  %2673 = vst [vmem:[#allocation1 + $0x23] ss:$4 sm:$0xff] %v2392_v27  ;;  %v4666_v18 = vld.sshfl [vmem:[#allocation1] sm:$0xff pattern:$0x73625140] }
 0x19c   : > { %v1159_v2 = vrot.slane %v4043_v36, 1  ;;  %v1160_v14 = vrot.slane %v4043_v36, 2  ;;  %v1161_v62 = vrot.slane %v4043_v36, 3  ;;  %v2879_v5 = vadd.f32 %v4657_v49, %v2878_v20  ;;  %2696 = vst [vmem:[#allocation1] ss:$4 sm:$0xff] %v2409_v15 }
 0x19d   : > { %v5010_v17 = vmov %v5009_v16  ;;  %v2142_v31 = vadd.f32 %v1926_v56, %v1445_v6  ;;  %v4675_v4 = vadd.f32 %v4250_v34, %v2139_v13  ;;  %v2411_v30 = vmax.f32 %v2283_v21, 0.0  ;;  %2697 = vst [vmem:[#allocation1 + $0x1] ss:$4 sm:$0xff] %v2410_v26 }
 0x19e   : > { %v2141_v50 = vadd.f32 %v1925_v25, %v5010_v17  ;;  %v2412_v35 = vmax.f32 %v2284_v32, 0.0  ;;  %v1359_v12 = vsel %vm777_vm7, %v4031_v43, %v1156_v38  ;;  %v1360_v46 = vsel %vm779_vm8, %v1157_v1, %v1158_v8  ;;  %2959 = vst.msk [vmem:[%s4664_s23] sm:$0xff] %vm2958_vm12, %v2879_v5 }
 0x19f   : > { %v1933_v28 = vrot.slane %v4618_v9, 2  ;;  %v2398_v60 = vmax.f32 %v2270_v41, 0.0  ;;  %v2399_v6 = vmax.f32 %v4648_v63, 0.0  ;;  %v2400_v16 = vmax.f32 %v2272_v33, 0.0  ;;  %2698 = vst [vmem:[#allocation1 + $0x2] ss:$4 sm:$0xff] %v2411_v30 }
 0x1a0   : > { %v4687_v58 = vadd.f32 %v3792_v45, %v2140_v51  ;;  %v1356_v54 = vsel %vm771_vm1, %v4031_v43, %v1156_v38  ;;  %v1357_v10 = vsel %vm773_vm10, %v1157_v1, %v1158_v8  ;;  %v1363_v23 = vsel %vm771_vm1, %v4043_v36, %v1159_v2  ;;  %2699 = vst [vmem:[#allocation1 + $0x3] ss:$4 sm:$0xff] %v2412_v35  ;;  %v2880_v26 = vpop.f32.mrf.mxu0 }
 0x1a1   : > { %v1364_v61 = vsel %vm773_vm10, %v1160_v14, %v1161_v62  ;;  %v1361_v27 = vsel %vm781_vm9, %v1359_v12, %v1360_v46  ;;  %v1366_v52 = vsel %vm777_vm7, %v4043_v36, %v1159_v2  ;;  %v1367_v25 = vsel %vm779_vm8, %v1160_v14, %v1161_v62  ;;  %v4734_v5 = vpop.f32.mrf.mxu3 }
 0x1a2   : > { %v2151_v56 = vadd.f32 %v4618_v9, %v1446_v11  ;;  %v4703_v43 = vadd.f32 %v3759_v53, %v2141_v50  ;;  %v4706_v13 = vadd.f32 %v3789_v42, %v2142_v31  ;;  %v2405_v37 = vmax.f32 %v4675_v4, 0.0  ;;  %v2675_v15 = vld.sshfl [vmem:[#allocation1 + $0x20] sm:$0xff pattern:$0x73625140] }
 0x1a3   : > { %v2152_v21 = vadd.f32 %v1933_v28, %v4597_v0  ;;  %v2406_v36 = vmax.f32 %v4687_v58, 0.0  ;;  %v4712_v38 = vsel %vm775_vm0, %v1356_v54, %v1357_v10  ;;  %v4715_v44 = vsel %vm775_vm0, %v1363_v23, %v1364_v61  ;;  %2680 = vst [vmem:[#allocation1 + $0x20] ss:$4 sm:$0xff] %v2397_v40 }
 0x1a4   : > { %v2881_v11 = vadd.f32 %v4657_v49, %v2880_v26  ;;  %v1362_v63 = vrot.slane %v1361_v27, 1  ;;  %v1368_v32 = vsel %vm781_vm9, %v1366_v52, %v1367_v25  ;;  %v1934_v0 = vrot.slane %v4618_v9, 4  ;;  %2681 = vst [vmem:[#allocation1 + $0x21] ss:$4 sm:$0xff] %v2398_v60 }
 0x1a5   : > { %v1935_v1 = vrot.slane %v4618_v9, 6  ;;  %v2289_v8 = vadd.f32 %v4250_v34, %v2151_v56  ;;  %v1162_v20 = vrot.slane %v4048_v24, 1  ;;  %v1163_v41 = vrot.slane %v4048_v24, 2  ;;  %2682 = vst [vmem:[#allocation1 + $0x22] ss:$4 sm:$0xff] %v2399_v6 }
 0x1a6   : > { %v1164_v57 = vrot.slane %v4048_v24, 3  ;;  %v1450_v40 = vperm.slane %v4712_v38, 0  ;;  %v1452_v33 = vperm.slane %v4715_v44, 0  ;;  %v2290_v51 = vadd.f32 %v3792_v45, %v2152_v21  ;;  %2683 = vst [vmem:[#allocation1 + $0x23] ss:$4 sm:$0xff] %v2400_v16 }
 0x1a7   : > { %v2777_v9 = vpack.c.bf16 %v2675_v15, %v4544_v48  ;;  %v1369_v2 = vrot.slane %v1368_v32, 1  ;;  %v1165_v14 = vrot.slane %v4053_v29, 1  ;;  %v1166_v34 = vrot.slane %v4053_v29, 2  ;;  %2960 = vst.msk [vmem:[%s4664_s23 + $0x8] sm:$0xff] %vm2958_vm12, %v2881_v11  ;;  %v4786_v32 = vld [vmem:[%s5005_s8] ss:$0 sm:$0xff] }
 0x1a8   : > { %v1167_v62 = vrot.slane %v4053_v29, 3  ;;  %v4738_v17 = vperm.slane %v1362_v63, 0  ;;  %v1930_v50 = vrot.slane %v4571_v59, 2  ;;  %v2153_v31 = vadd.f32 %v1934_v0, %v1448_v55 }
 0x1a9   : > { %v2154_v48 = vadd.f32 %v1935_v1, %v4625_v3  ;;  %v1931_v30 = vrot.slane %v4571_v59, 4  ;;  %v2417_v35 = vmax.f32 %v2289_v8, 0.0  ;;  %v1373_v12 = vsel %vm777_vm7, %v4048_v24, %v1162_v20  ;;  %v2883_v55 = vpop.f32.mrf.mxu0  ;;  %v4755_v3 = vld.sshfl [vmem:[#allocation1] sm:$0xff pattern:$0x73625140] }
 0x1aa   : > { %v1374_v46 = vsel %vm779_vm8, %v1163_v41, %v1164_v57  ;;  %v1932_v28 = vrot.slane %v4571_v59, 6  ;;  %v2147_v60 = vadd.f32 %v4571_v59, %v1450_v40  ;;  %v2418_v6 = vmax.f32 %v2290_v51, 0.0  ;;  %v4797_v51 = vpop.f32.mrf.mxu3 }
 0x1ab   : > { %v1370_v39 = vsel %vm771_vm1, %v4048_v24, %v1162_v20  ;;  %3361 = vmatmul.msk.bf16.gmra.mxu2 %vm2820_vm11, %v2777_v9  ;;  %v1371_v16 = vsel %vm773_vm10, %v1163_v41, %v1164_v57  ;;  %v1380_v54 = vsel %vm777_vm7, %v4053_v29, %v1165_v14  ;;  %v1381_v10 = vsel %vm779_vm8, %v1166_v34, %v1167_v62 }
 0x1ac   : > { %v2884_v23 = vadd.f32 %v4657_v49, %v2883_v55  ;;  %2706 = vst [vmem:[#allocation1] ss:$4 sm:$0xff] %v2417_v35  ;;  %v2148_v59 = vadd.f32 %v1930_v50, %v4738_v17  ;;  %v2291_v24 = vadd.f32 %v3759_v53, %v2153_v31  ;;  %v2292_v61 = vadd.f32 %v3789_v42, %v2154_v48 }
 0x1ad   : > { %v1375_v27 = vsel %vm781_vm9, %v1373_v12, %v1374_v46  ;;  %2707 = vst [vmem:[#allocation1 + $0x1] ss:$4 sm:$0xff] %v2418_v6  ;;  %v2407_v52 = vmax.f32 %v4703_v43, 0.0  ;;  %v1453_v25 = vperm.slane %v1369_v2, 0  ;;  %v2149_v56 = vadd.f32 %v1931_v30, %v1452_v33 }
 0x1ae   : > { %v4769_v21 = vld.sshfl [vmem:[#allocation1 + $0x20] sm:$0xff pattern:$0x73625140]  ;;  %2961 = vst.msk [vmem:[%s4664_s23 + $0x10] sm:$0xff] %vm2958_vm12, %v2884_v23  ;;  %v4774_v15 = vsel %vm775_vm0, %v1370_v39, %v1371_v16  ;;  %v1377_v26 = vsel %vm771_vm1, %v4053_v29, %v1165_v14  ;;  %v1378_v11 = vsel %vm773_vm10, %v1166_v34, %v1167_v62  ;;  %v1382_v63 = vsel %vm781_vm9, %v1380_v54, %v1381_v10 }
 0x1af   : > { %2690 = vst [vmem:[#allocation1 + $0x20] ss:$4 sm:$0xff] %v2405_v37  ;;  %v2408_v43 = vmax.f32 %v4706_v13, 0.0  ;;  %v2285_v0 = vadd.f32 %v4786_v32, %v2147_v60  ;;  %v1376_v1 = vrot.slane %v1375_v27, 1  ;;  %v2150_v29 = vadd.f32 %v1932_v28, %v1453_v25 }
 0x1b0   : > { %2691 = vst [vmem:[#allocation1 + $0x21] ss:$4 sm:$0xff] %v2406_v36  ;;  %v2286_v8 = vadd.f32 %v3792_v45, %v2148_v59  ;;  %v2419_v20 = vmax.f32 %v2291_v24, 0.0  ;;  %v2420_v41 = vmax.f32 %v2292_v61, 0.0  ;;  %v4793_v4 = vsel %vm775_vm0, %v1377_v26, %v1378_v11 }
 0x1b1   : > { %2692 = vst [vmem:[#allocation1 + $0x22] ss:$4 sm:$0xff] %v2407_v52  ;;  %v1383_v13 = vrot.slane %v1382_v63, 1  ;;  %v1454_v37 = vperm.slane %v4774_v15, 0  ;;  %v1939_v57 = vrot.slane %v4734_v5, 2  ;;  %v2287_v58 = vadd.f32 %v3759_v53, %v2149_v56  ;;  %v2885_v14 = vpop.f32.mrf.mxu0 }
 0x1b2   : > { %2693 = vst [vmem:[#allocation1 + $0x23] ss:$4 sm:$0xff] %v2408_v43  ;;  %v1936_v36 = vrot.slane %v4677_v7, 2  ;;  %v1937_v9 = vrot.slane %v4677_v7, 4  ;;  %v1940_v2 = vrot.slane %v4734_v5, 4  ;;  %v4803_v34 = vperm.slane %v1376_v1, 0  ;;  %v1818_v63 = vpop.f32.mrf.mxu3 }
 0x1b3   : > { %2708 = vst [vmem:[#allocation1 + $0x2] ss:$4 sm:$0xff] %v2419_v20  ;;  %v1941_v62 = vrot.slane %v4734_v5, 6  ;;  %v2159_v50 = vadd.f32 %v4734_v5, %v1454_v37  ;;  %v2886_v31 = vadd.f32 %v4657_v49, %v2885_v14  ;;  %v2288_v48 = vadd.f32 %v3789_v42, %v2150_v29 }
 0x1b4   : > { %2709 = vst [vmem:[#allocation1 + $0x3] ss:$4 sm:$0xff] %v2420_v41  ;;  %v2413_v30 = vmax.f32 %v2285_v0, 0.0  ;;  %v2414_v35 = vmax.f32 %v2286_v8, 0.0  ;;  %v1456_v12 = vperm.slane %v4793_v4, 0  ;;  %v1938_v46 = vrot.slane %v4677_v7, 6 }
 0x1b5   : > { %v2155_v28 = vadd.f32 %v4677_v7, %v1450_v40  ;;  %v4816_v60 = vperm.slane %v1383_v13, 0  ;;  %v2160_v6 = vadd.f32 %v1939_v57, %v4803_v34  ;;  %2962 = vst.msk [vmem:[%s4664_s23 + $0x18] sm:$0xff] %vm2958_vm12, %v2886_v31  ;;  %v1168_v39 = vrot.slane %v4055_v22, 1 }
 0x1b6   : > { %v2161_v5 = vadd.f32 %v1940_v2, %v1456_v12  ;;  %v1169_v55 = vrot.slane %v4055_v22, 2  ;;  %v1170_v16 = vrot.slane %v4055_v22, 3  ;;  %v2156_v54 = vadd.f32 %v1936_v36, %v4738_v17 }
 0x1b7   : > { %v2157_v7 = vadd.f32 %v1937_v9, %v1452_v33  ;;  %v2162_v38 = vadd.f32 %v1941_v62, %v4816_v60  ;;  %v2297_v40 = vadd.f32 %v4786_v32, %v2159_v50  ;;  %v1171_v10 = vrot.slane %v4059_v19, 1 }
 0x1b8   : > { %v1172_v23 = vrot.slane %v4059_v19, 2  ;;  %v1173_v59 = vrot.slane %v4059_v19, 3  ;;  %v2778_v24 = vpack.c.bf16 %v4769_v21, %v4593_v47  ;;  %v2415_v27 = vmax.f32 %v2287_v58, 0.0 }
 0x1b9   : > { %v4836_v61 = vld.sshfl [vmem:[#allocation1 + $0x20] sm:$0xff pattern:$0x73625140]  ;;  %v2158_v17 = vadd.f32 %v1938_v46, %v1453_v25  ;;  %v2298_v44 = vadd.f32 %v3792_v45, %v2160_v6  ;;  %v2416_v33 = vmax.f32 %v2288_v48, 0.0  ;;  %v2299_v52 = vadd.f32 %v3759_v53, %v2161_v5  ;;  %v2888_v11 = vpop.f32.mrf.mxu0 }
 0x1ba   : > { %2700 = vst [vmem:[#allocation1 + $0x20] ss:$4 sm:$0xff] %v2413_v30  ;;  %v1387_v56 = vsel %vm777_vm7, %v4055_v22, %v1168_v39  ;;  %v1388_v26 = vsel %vm779_vm8, %v1169_v55, %v1170_v16  ;;  %v2293_v47 = vadd.f32 %v4786_v32, %v2155_v28  ;;  %v2294_v25 = vadd.f32 %v3792_v45, %v2156_v54 }
 0x1bb   : > { %3362 = vmatmul.msk.bf16.gmra.mxu2 %vm2820_vm11, %v2778_v24  ;;  %2701 = vst [vmem:[#allocation1 + $0x21] ss:$4 sm:$0xff] %v2414_v35  ;;  %v2300_v21 = vadd.f32 %v3789_v42, %v2162_v38  ;;  %v2889_v43 = vadd.f32 %v4657_v49, %v2888_v11  ;;  %v4848_v0 = vld.sshfl [vmem:[#allocation1] sm:$0xff pattern:$0x73625140]  ;;  %v2295_v1 = vadd.f32 %v3759_v53, %v2157_v7  ;;  %v2425_v29 = vmax.f32 %v2297_v40, 0.0 }
 0x1bc   : > { %2702 = vst [vmem:[#allocation1 + $0x22] ss:$4 sm:$0xff] %v2415_v27  ;;  %v1394_v8 = vsel %vm777_vm7, %v4059_v19, %v1171_v10  ;;  %v1395_v20 = vsel %vm779_vm8, %v1172_v23, %v1173_v59  ;;  %v2426_v41 = vmax.f32 %v2298_v44, 0.0  ;;  %v1384_v13 = vsel %vm771_vm1, %v4055_v22, %v1168_v39 }
 0x1bd   : > { %2703 = vst [vmem:[#allocation1 + $0x23] ss:$4 sm:$0xff] %v2416_v33  ;;  %v1385_v57 = vsel %vm773_vm10, %v1169_v55, %v1170_v16  ;;  %v1389_v58 = vsel %vm781_vm9, %v1387_v56, %v1388_v26  ;;  %v2296_v36 = vadd.f32 %v3789_v42, %v2158_v17  ;;  %v2427_v9 = vmax.f32 %v2299_v52, 0.0 }
 0x1be   : > { %2963 = vst.msk [vmem:[%s4664_s23 + $0x20] sm:$0xff] %vm2958_vm12, %v2889_v43  ;;  %v1945_v2 = vrot.slane %v1818_v63, 2  ;;  %v2428_v14 = vmax.f32 %v2300_v21, 0.0  ;;  %v1391_v62 = vsel %vm771_vm1, %v4059_v19, %v1171_v10  ;;  %v1392_v50 = vsel %vm773_vm10, %v1172_v23, %v1173_v59 }
 0x1bf   : > { %2716 = vst [vmem:[#allocation1] ss:$4 sm:$0xff] %v2425_v29  ;;  %v1396_v31 = vsel %vm781_vm9, %v1394_v8, %v1395_v20  ;;  %v1946_v22 = vrot.slane %v1818_v63, 4  ;;  %v4866_v48 = vsel %vm775_vm0, %v1384_v13, %v1385_v57  ;;  %v1390_v30 = vrot.slane %v1389_v58, 1 }
 0x1c0   : > { %2717 = vst [vmem:[#allocation1 + $0x1] ss:$4 sm:$0xff] %v2426_v41  ;;  %v2421_v35 = vmax.f32 %v2293_v47, 0.0  ;;  %v2422_v46 = vmax.f32 %v2294_v25, 0.0  ;;  %v2423_v28 = vmax.f32 %v2295_v1, 0.0  ;;  %v2167_v6 = vadd.f32 %v1818_v63, %v1454_v37  ;;  %v1820_v25 = vpop.f32.mrf.mxu3 }
 0x1c1   : > { %2718 = vst [vmem:[#allocation1 + $0x2] ss:$4 sm:$0xff] %v2427_v9  ;;  %v1942_v19 = vrot.slane %v4797_v51, 2  ;;  %v2168_v5 = vadd.f32 %v1945_v2, %v4803_v34  ;;  %v1393_v39 = vsel %vm775_vm0, %v1391_v62, %v1392_v50  ;;  %v1397_v55 = vrot.slane %v1396_v31, 1  ;;  %v2890_v16 = vpop.f32.mrf.mxu0 }
 0x1c2   : > { %2719 = vst [vmem:[#allocation1 + $0x3] ss:$4 sm:$0xff] %v2428_v14  ;;  %v2424_v54 = vmax.f32 %v2296_v36, 0.0  ;;  %v1943_v7 = vrot.slane %v4797_v51, 4  ;;  %v1458_v38 = vperm.slane %v4866_v48, 0  ;;  %v1944_v10 = vrot.slane %v4797_v51, 6 }
 0x1c3   : > { %v2169_v15 = vadd.f32 %v1946_v22, %v1456_v12  ;;  %v1459_v37 = vperm.slane %v1390_v30, 0  ;;  %v2891_v34 = vadd.f32 %v4657_v49, %v2890_v16  ;;  %v1947_v23 = vrot.slane %v1818_v63, 6 }
 0x1c4   : > { %v4875_v40 = vld.sshfl [vmem:[#allocation1 + $0x20] sm:$0xff pattern:$0x73625140]  ;;  %v2305_v59 = vadd.f32 %v4786_v32, %v2167_v6  ;;  %v1460_v24 = vperm.slane %v1393_v39, 0  ;;  %v2163_v27 = vadd.f32 %v4797_v51, %v1458_v38  ;;  %v2306_v17 = vadd.f32 %v3792_v45, %v2168_v5 }
 0x1c5   : > { %2710 = vst [vmem:[#allocation1 + $0x20] ss:$4 sm:$0xff] %v2421_v35  ;;  %v1461_v44 = vperm.slane %v1397_v55, 0  ;;  %v2164_v33 = vadd.f32 %v1942_v19, %v1459_v37  ;;  %v2307_v4 = vadd.f32 %v3759_v53, %v2169_v15  ;;  %v2779_v56 = vpack.c.bf16 %v4836_v61, %v4666_v18 }
 0x1c6   : > { %2711 = vst [vmem:[#allocation1 + $0x21] ss:$4 sm:$0xff] %v2422_v46  ;;  %v2165_v52 = vadd.f32 %v1943_v7, %v1460_v24  ;;  %v2170_v26 = vadd.f32 %v1947_v23, %v4816_v60  ;;  %v2433_v11 = vmax.f32 %v2305_v59, 0.0  ;;  %v2301_v51 = vadd.f32 %v4786_v32, %v2163_v27 }
 0x1c7   : > { %2712 = vst [vmem:[#allocation1 + $0x22] ss:$4 sm:$0xff] %v2423_v28  ;;  %v2166_v12 = vadd.f32 %v1944_v10, %v1461_v44  ;;  %v2434_v47 = vmax.f32 %v2306_v17, 0.0  ;;  %v2302_v21 = vadd.f32 %v3792_v45, %v2164_v33  ;;  %v2435_v61 = vmax.f32 %v2307_v4, 0.0 }
 0x1c8   : > { %2713 = vst [vmem:[#allocation1 + $0x23] ss:$4 sm:$0xff] %v2424_v54  ;;  %v2303_v1 = vadd.f32 %v3759_v53, %v2165_v52  ;;  %v2308_v29 = vadd.f32 %v3789_v42, %v2170_v26  ;;  %v1948_v8 = vrot.slane %v1820_v25, 2  ;;  %v1949_v20 = vrot.slane %v1820_v25, 4 }
 0x1c9   : > { %2964 = vst.msk [vmem:[%s4664_s23 + $0x28] sm:$0xff] %vm2958_vm12, %v2891_v34  ;;  %v4893_v43 = vld.sshfl [vmem:[#allocation1] sm:$0xff pattern:$0x73625140]  ;;  %v2304_v60 = vadd.f32 %v3789_v42, %v2166_v12  ;;  %v2429_v41 = vmax.f32 %v2301_v51, 0.0  ;;  %v2430_v13 = vmax.f32 %v2302_v21, 0.0  ;;  %v2171_v9 = vadd.f32 %v1820_v25, %v1458_v38 }
 0x1ca   : > { %2726 = vst [vmem:[#allocation1] ss:$4 sm:$0xff] %v2433_v11  ;;  %v1950_v58 = vrot.slane %v1820_v25, 6  ;;  %v2431_v36 = vmax.f32 %v2303_v1, 0.0  ;;  %v2436_v14 = vmax.f32 %v2308_v29, 0.0  ;;  %v2172_v62 = vadd.f32 %v1948_v8, %v1459_v37 }
 0x1cb   : > { %3363 = vmatmul.msk.bf16.gmra.mxu2 %vm2820_vm11, %v2779_v56  ;;  %2727 = vst [vmem:[#allocation1 + $0x1] ss:$4 sm:$0xff] %v2434_v47  ;;  %v2432_v2 = vmax.f32 %v2304_v60, 0.0  ;;  %v2173_v50 = vadd.f32 %v1949_v20, %v1460_v24  ;;  %v2309_v30 = vadd.f32 %v4786_v32, %v2171_v9  ;;  %v2780_v19 = vpack.c.bf16 %v4875_v40, %v4755_v3 }
 0x1cc   : > { %2728 = vst [vmem:[#allocation1 + $0x2] ss:$4 sm:$0xff] %v2435_v61  ;;  %v2174_v22 = vadd.f32 %v1950_v58, %v1461_v44  ;;  %v2310_v35 = vadd.f32 %v3792_v45, %v2172_v62 }
 0x1cd   : > { %v2893_v63 = vpop.f32.mrf.mxu0  ;;  %2729 = vst [vmem:[#allocation1 + $0x3] ss:$4 sm:$0xff] %v2436_v14  ;;  %v2311_v46 = vadd.f32 %v3759_v53, %v2173_v50  ;;  %v2437_v6 = vmax.f32 %v2309_v30, 0.0 }
 0x1ce   : > { %v2894_v18 = vadd.f32 %v4657_v49, %v2893_v63  ;;  %v2312_v28 = vadd.f32 %v3789_v42, %v2174_v22  ;;  %v2438_v5 = vmax.f32 %v2310_v35, 0.0 }
 0x1cf   : > { %v2715_v57 = vld.sshfl [vmem:[#allocation1 + $0x20] sm:$0xff pattern:$0x73625140]  ;;  %v2439_v55 = vmax.f32 %v2311_v46, 0.0 }
 0x1d0   : > { %2965 = vst.msk [vmem:[%s4664_s23 + $0x30] sm:$0xff] %vm2958_vm12, %v2894_v18  ;;  %v2440_v32 = vmax.f32 %v2312_v28, 0.0  ;;  %v2781_v16 = vpack.c.bf16 %v2715_v57, %v4848_v0 }
 0x1d1   : > { %2720 = vst [vmem:[#allocation1 + $0x20] ss:$4 sm:$0xff] %v2429_v41 }
 0x1d2   : > { %2721 = vst [vmem:[#allocation1 + $0x21] ss:$4 sm:$0xff] %v2430_v13 }
 0x1d3   : > { %2722 = vst [vmem:[#allocation1 + $0x22] ss:$4 sm:$0xff] %v2431_v36 }
 0x1d4   : > { %2723 = vst [vmem:[#allocation1 + $0x23] ss:$4 sm:$0xff] %v2432_v2  ;;  %v2734_v24 = vld.sshfl [vmem:[#allocation1] sm:$0xff pattern:$0x73625140] }
 0x1d5   : > { %v2895_v31 = vpop.f32.mrf.mxu0 }
 0x1d6   : > { %v2896_v48 = vadd.f32 %v4657_v49, %v2895_v31 }
 0x1d8   : > { %2966 = vst.msk [vmem:[%s4664_s23 + $0x38] sm:$0xff] %vm2958_vm12, %v2896_v48 }
 0x1db   : > { %v2725_v39 = vld.sshfl [vmem:[#allocation1 + $0x20] sm:$0xff pattern:$0x73625140]  ;;  %3364 = vmatmul.msk.bf16.gmra.mxu2 %vm2820_vm11, %v2780_v19 }
 0x1dc   : > { %2730 = vst [vmem:[#allocation1 + $0x20] ss:$4 sm:$0xff] %v2437_v6  ;;  %v2782_v10 = vpack.c.bf16 %v2725_v39, %v4893_v43 }
 0x1dd   : > { %v2898_v45 = vpop.f32.mrf.mxu0  ;;  %2731 = vst [vmem:[#allocation1 + $0x21] ss:$4 sm:$0xff] %v2438_v5 }
 0x1de   : > { %v2899_v53 = vadd.f32 %v4657_v49, %v2898_v45  ;;  %2732 = vst [vmem:[#allocation1 + $0x22] ss:$4 sm:$0xff] %v2439_v55 }
 0x1df   : > { %2733 = vst [vmem:[#allocation1 + $0x23] ss:$4 sm:$0xff] %v2440_v32 }
 0x1e0   : > { %2967 = vst.msk [vmem:[%s4664_s23 + $0x40] sm:$0xff] %vm2958_vm12, %v2899_v53 }
 0x1e5   : > { %v2900_v42 = vpop.f32.mrf.mxu0 }
 0x1e6   : > { %v2901_v3 = vadd.f32 %v4657_v49, %v2900_v42  ;;  %v2735_v23 = vld.sshfl [vmem:[#allocation1 + $0x20] sm:$0xff pattern:$0x73625140] }
 0x1e7   : > { %v2783_v17 = vpack.c.bf16 %v2735_v23, %v2734_v24 }
 0x1e8   : > { %2968 = vst.msk [vmem:[%s4664_s23 + $0x48] sm:$0xff] %vm2958_vm12, %v2901_v3 }
 0x1eb   : > { %3365 = vmatmul.msk.bf16.gmra.mxu2 %vm2820_vm11, %v2781_v16 }
 0x1f0   : > { %v2903_v54 = vpop.f32.mrf.mxu0 }
 0x1f1   : > { %v2904_v7 = vadd.f32 %v4657_v49, %v2903_v54 }
 0x1f3   : > { %v2913_v38 = vpop.f32.mrf.mxu2  ;;  %2969 = vst.msk [vmem:[%s4664_s23 + $0x50] sm:$0xff] %vm2958_vm12, %v2904_v7 }
 0x1f4   : > { %v2914_v40 = vadd.f32 %v4657_v49, %v2913_v38 }
 0x1f6   : > { %2973 = vst.msk [vmem:[%s4664_s23 + $0x70] sm:$0xff] %vm2958_vm12, %v2914_v40 }
 0x1f8   : > { %v2905_v15 = vpop.f32.mrf.mxu0 }
 0x1f9   : > { %v2906_v37 = vadd.f32 %v4657_v49, %v2905_v15 }
 0x1fb   : > { %3366 = vmatmul.msk.bf16.gmra.mxu2 %vm2820_vm11, %v2782_v10  ;;  %v2915_v0 = vpop.f32.mrf.mxu2  ;;  %2970 = vst.msk [vmem:[%s4664_s23 + $0x58] sm:$0xff] %vm2958_vm12, %v2906_v37 }
 0x1fc   : > { %v2916_v34 = vadd.f32 %v4657_v49, %v2915_v0 }
 0x1fe   : > { %2974 = vst.msk [vmem:[%s4664_s23 + $0x78] sm:$0xff] %vm2958_vm12, %v2916_v34 }
 0x206   : > { %v2908_v59 = vpop.f32.mrf.mxu0 }
 0x207   : > { %v2909_v27 = vadd.f32 %v4657_v49, %v2908_v59 }
 0x209   : > { %2971 = vst.msk [vmem:[%s4664_s23 + $0x60] sm:$0xff] %vm2958_vm12, %v2909_v27 }
 0x20b   : > { %3367 = vmatmul.msk.bf16.gmra.mxu2 %vm2820_vm11, %v2783_v17 }
 0x20e   : > { %v2910_v44 = vpop.f32.mrf.mxu0 }
 0x20f   : > { %v2911_v33 = vadd.f32 %v4657_v49, %v2910_v44 }
 0x211   : > { %2972 = vst.msk [vmem:[%s4664_s23 + $0x68] sm:$0xff] %vm2958_vm12, %v2911_v33 }
 0x21e   : > { %v2918_v52 = vpop.f32.mrf.mxu2 }
 0x21f   : > { %v2919_v4 = vadd.f32 %v4657_v49, %v2918_v52 }
 0x221   : > { %2975 = vst.msk [vmem:[%s4664_s23 + $0x80] sm:$0xff] %vm2958_vm12, %v2919_v4 }
 0x226   : > { %v2920_v12 = vpop.f32.mrf.mxu2 }
 0x227   : > { %v2921_v56 = vadd.f32 %v4657_v49, %v2920_v12 }
 0x229   : > { %2976 = vst.msk [vmem:[%s4664_s23 + $0x88] sm:$0xff] %vm2958_vm12, %v2921_v56 }
 0x22e   : > { %v2923_v26 = vpop.f32.mrf.mxu2 }
 0x22f   : > { %v2924_v11 = vadd.f32 %v4657_v49, %v2923_v26 }
 0x231   : > { %2977 = vst.msk [vmem:[%s4664_s23 + $0x90] sm:$0xff] %vm2958_vm12, %v2924_v11 }
 0x236   : > { %v2925_v51 = vpop.f32.mrf.mxu2 }
 0x237   : > { %v2926_v47 = vadd.f32 %v4657_v49, %v2925_v51 }
 0x239   : > { %2978 = vst.msk [vmem:[%s4664_s23 + $0x98] sm:$0xff] %vm2958_vm12, %v2926_v47 }
 0x23e   : > { %v2928_v25 = vpop.f32.mrf.mxu2 }
 0x23f   : > { %v2929_v21 = vadd.f32 %v4657_v49, %v2928_v25 }
 0x241   : > { %2979 = vst.msk [vmem:[%s4664_s23 + $0xa0] sm:$0xff] %vm2958_vm12, %v2929_v21 }
 0x246   : > { %v2930_v63 = vpop.f32.mrf.mxu2 }
 0x247   : > { %v2931_v43 = vadd.f32 %v4657_v49, %v2930_v63 }
 0x249   : > { %2980 = vst.msk [vmem:[%s4664_s23 + $0xa8] sm:$0xff] %vm2958_vm12, %v2931_v43 }
 0x24e   : > { %v2933_v1 = vpop.f32.mrf.mxu2 }
 0x24f   : > { %v2934_v18 = vadd.f32 %v4657_v49, %v2933_v1 }
 0x251   : > { %2981 = vst.msk [vmem:[%s4664_s23 + $0xb0] sm:$0xff] %vm2958_vm12, %v2934_v18 }
 0x256   : > { %v2935_v61 = vpop.f32.mrf.mxu2 }
 0x257   : > { %v2936_v60 = vadd.f32 %v4657_v49, %v2935_v61 }
 0x259   : > { %2982 = vst.msk [vmem:[%s4664_s23 + $0xb8] sm:$0xff] %vm2958_vm12, %v2936_v60 }
 0x25e   : > { %v2938_v29 = vpop.f32.mrf.mxu2 }
 0x25f   : > { %v2939_v8 = vadd.f32 %v4657_v49, %v2938_v29 }
 0x261   : > { %2983 = vst.msk [vmem:[%s4664_s23 + $0xc0] sm:$0xff] %vm2958_vm12, %v2939_v8 }
 0x266   : > { %v2940_v20 = vpop.f32.mrf.mxu2 }
 0x267   : > { %v2941_v41 = vadd.f32 %v4657_v49, %v2940_v20 }
 0x269   : > { %2984 = vst.msk [vmem:[%s4664_s23 + $0xc8] sm:$0xff] %vm2958_vm12, %v2941_v41 }
 0x26e   : > { %v2943_v13 = vpop.f32.mrf.mxu2 }
 0x26f   : > { %v2944_v57 = vadd.f32 %v4657_v49, %v2943_v13 }
 0x271   : > { %2985 = vst.msk [vmem:[%s4664_s23 + $0xd0] sm:$0xff] %vm2958_vm12, %v2944_v57 }
 0x276   : > { %v2945_v58 = vpop.f32.mrf.mxu2 }
 0x277   : > { %v2946_v36 = vadd.f32 %v4657_v49, %v2945_v58 }
 0x279   : > { %2986 = vst.msk [vmem:[%s4664_s23 + $0xd8] sm:$0xff] %vm2958_vm12, %v2946_v36 }
 0x27e   : > { %v2948_v9 = vpop.f32.mrf.mxu2 }
 0x27f   : > { %v2949_v2 = vadd.f32 %v4657_v49, %v2948_v9 }
 0x281   : > { %2987 = vst.msk [vmem:[%s4664_s23 + $0xe0] sm:$0xff] %vm2958_vm12, %v2949_v2 }
 0x286   : > { %v2950_v14 = vpop.f32.mrf.mxu2 }
 0x287   : > { %v2951_v62 = vadd.f32 %v4657_v49, %v2950_v14 }
 0x289   : > { %2988 = vst.msk [vmem:[%s4664_s23 + $0xe8] sm:$0xff] %vm2958_vm12, %v2951_v62 }
 0x28e   : > { %v2953_v50 = vpop.f32.mrf.mxu2 }
 0x28f   : > { %v2954_v31 = vadd.f32 %v4657_v49, %v2953_v50 }
 0x291   : > { %2989 = vst.msk [vmem:[%s4664_s23 + $0xf0] sm:$0xff] %vm2958_vm12, %v2954_v31 }
 0x296   : > { %v2955_v22 = vpop.f32.mrf.mxu2 }
 0x297   : > { %v2956_v48 = vadd.f32 %v4657_v49, %v2955_v22 }
 0x299   : > { %2990 = vst.msk [vmem:[%s4664_s23 + $0xf8] sm:$0xff] %vm2958_vm12, %v2956_v48 }
 0x29a PF: > { %s21_s19 = sadd.s32 1, %s3480_s19   ;;  %s5011_s17 = smov %s3476_s18 }
 0x29b   : > { %p18_p5 = scmp.ge.s32.totalorder %s21_s19, 4   ;;  %s5012_s18 = smov %s5014_s20 }
 0x29d   :  { %20 = sbr.rel (!%p18_p5) target bundleno = 2 (0x2), region = 110 }

</bundles_post_ra>
